<compile_context>
chip_gen: v6e
topology: v6e:2x2x1
jax: 0.10.0
libtpu: 0.0.40
codegen_flags: <defaults>
</compile_context>

<pallas_src>
import functools

import jax
import jax.numpy as jnp
from jax.experimental import pallas as pl
from jax.experimental.pallas import tpu as pltpu


# ----------------------------- kernel ---------------------------------------

def _encoder_layer_kernel(
    h_ref,        # (1, S, D)    full hidden states for this batch element
    mask_ref,     # (1, 1, tq, S) combined attention + causal mask (f32)
    ln1g_ref, ln1b_ref,          # (1, D) f32
    qw_ref, qb_ref,              # (D, D) bf16 (scale folded), (1, D) f32 (scale folded)
    kw_ref, kb_ref,              # (D, D) bf16, (1, D) f32
    vw_ref, vb_ref,              # (D, D) bf16, (1, D) f32
    ow_ref, ob_ref,              # (D, D) bf16, (1, D) f32
    ln2g_ref, ln2b_ref,          # (1, D) f32
    fc1w_ref, fc1b_ref,          # (D, I) bf16, (1, I) f32
    fc2w_ref, fc2b_ref,          # (I, D) bf16, (1, D) f32
    out_ref,                     # (1, tq, D)
    *,
    num_heads: int,
    head_size: int,
    q_tile: int,
    eps: float,
):
    H, hd = num_heads, head_size
    D = H * hd
    S = h_ref.shape[1]
    tq = q_tile

    j = pl.program_id(1)
    row0 = pl.multiple_of(j * tq, tq)

    # ---- LayerNorm 1 over the full sequence (K/V need every row) ----
    xf = h_ref[0].astype(jnp.float32)                         # (S, D)
    mu = jnp.mean(xf, axis=-1, keepdims=True)
    var = jnp.mean((xf - mu) ** 2, axis=-1, keepdims=True)
    xn = (xf - mu) * jax.lax.rsqrt(var + eps)
    xn = xn * ln1g_ref[...] + ln1b_ref[...]
    xn_bf = xn.astype(jnp.bfloat16)

    # ---- rows handled by this q-tile (residual path + query LN) ----
    xq = h_ref[0, pl.ds(row0, tq), :].astype(jnp.float32)     # (tq, D)  residual 1
    muq = jnp.mean(xq, axis=-1, keepdims=True)
    varq = jnp.mean((xq - muq) ** 2, axis=-1, keepdims=True)
    xnq = (xq - muq) * jax.lax.rsqrt(varq + eps)
    xnq = xnq * ln1g_ref[...] + ln1b_ref[...]
    xnq_bf = xnq.astype(jnp.bfloat16)

    # ---- projections: x @ W (weights pre-transposed on host, bf16 -> f32 acc) ----
    q = jnp.dot(xnq_bf, qw_ref[...], preferred_element_type=jnp.float32) + qb_ref[...]
    k = jnp.dot(xn_bf,  kw_ref[...], preferred_element_type=jnp.float32) + kb_ref[...]
    v = jnp.dot(xn_bf,  vw_ref[...], preferred_element_type=jnp.float32) + vb_ref[...]

    # ---- batched multi-head attention (single einsum over all heads) ----
    qh = q.astype(jnp.bfloat16).reshape(tq, H, hd).transpose(1, 0, 2)   # (H, tq, hd)
    kh = k.astype(jnp.bfloat16).reshape(S, H, hd).transpose(1, 0, 2)    # (H, S, hd)
    vh = v.astype(jnp.bfloat16).reshape(S, H, hd).transpose(1, 0, 2)    # (H, S, hd)

    s = jnp.einsum("hqd,hkd->hqk", qh, kh,
                   preferred_element_type=jnp.float32)                  # (H, tq, S)
    s = s + mask_ref[0]                                                 # (1, tq, S) bcast

    s = s - jnp.max(s, axis=-1, keepdims=True)
    p = jnp.exp(s)
    denom = jnp.sum(p, axis=-1, keepdims=True)
    p = p * pl.reciprocal(denom, approx=True)
    # dropout (p = config.attention_dropout) is identity in eval mode

    ctx = jnp.einsum("hqk,hkd->hqd", p.astype(jnp.bfloat16), vh,
                     preferred_element_type=jnp.float32)                # (H, tq, hd)
    ctx = ctx.transpose(1, 0, 2).reshape(tq, D)

    attn = jnp.dot(ctx.astype(jnp.bfloat16), ow_ref[...],
                   preferred_element_type=jnp.float32) + ob_ref[...]

    # ---- residual 1 ----
    h1 = xq + attn                                                       # (tq, D) f32

    # ---- LayerNorm 2 + MLP (fc1 -> quick_gelu -> fc2) ----
    mu2 = jnp.mean(h1, axis=-1, keepdims=True)
    var2 = jnp.mean((h1 - mu2) ** 2, axis=-1, keepdims=True)
    h1n = (h1 - mu2) * jax.lax.rsqrt(var2 + eps)
    h1n = h1n * ln2g_ref[...] + ln2b_ref[...]

    z = jnp.dot(h1n.astype(jnp.bfloat16), fc1w_ref[...],
                preferred_element_type=jnp.float32) + fc1b_ref[...]      # (tq, I)
    z = z * jax.nn.sigmoid(1.702 * z)                                    # quick_gelu (f32)
    y = jnp.dot(z.astype(jnp.bfloat16), fc2w_ref[...],
                preferred_element_type=jnp.float32) + fc2b_ref[...]      # (tq, D)

    # ---- residual 2 ----
    out_ref[0] = (h1 + y).astype(out_ref.dtype)


# ----------------------------- wrapper ---------------------------------------

def _pick_q_tile(S: int) -> int:
    for t in (256, 128, 64, 32, 16, 8):
        if t <= S and S % t == 0:
            return t
    return S  # fallback: single full-length tile (e.g. S = 577 vision CLIP)


def clip_encoder_layer(hidden_states, attention_mask, causal_attention_mask,
                       params, *, num_heads, eps=1e-5, q_tile=None):
    B, S, D = hidden_states.shape
    head_size = D // num_heads
    scale = head_size ** (-0.5)

    tq = q_tile if q_tile is not None else _pick_q_tile(S)
    n_q_tiles = S // tq

    # ---- host-side weight prep: split qkv, fold softmax scale into q, pre-transpose
    #      so the kernel does plain x @ W, and cast matmul weights to bf16 ----
    qkv_w = params["qkv_w"]                       # (3D, D), PyTorch y = x @ W.T + b
    qkv_b = params["qkv_b"]                       # (1, 3D)
    q_w_t = (qkv_w[0:D] * scale).T.astype(jnp.bfloat16)           # (D, D)
    k_w_t = qkv_w[D:2 * D].T.astype(jnp.bfloat16)                 # (D, D)
    v_w_t = qkv_w[2 * D:3 * D].T.astype(jnp.bfloat16)             # (D, D)
    q_b = (qkv_b[:, 0:D] * scale).astype(jnp.float32)             # (1, D)
    k_b = qkv_b[:, D:2 * D].astype(jnp.float32)
    v_b = qkv_b[:, 2 * D:3 * D].astype(jnp.float32)
    out_w_t = params["out_w"].T.astype(jnp.bfloat16)              # (D, D)
    fc1_w_t = params["fc1_w"].T.astype(jnp.bfloat16)              # (D, I)
    fc2_w_t = params["fc2_w"].T.astype(jnp.bfloat16)              # (I, D)

    # ---- combine the two additive masks once on the host ----
    if attention_mask is None and causal_attention_mask is None:
        mask = jnp.zeros((B, 1, S, S), jnp.float32)
    elif attention_mask is None:
        mask = causal_attention_mask.astype(jnp.float32)
    elif causal_attention_mask is None:
        mask = attention_mask.astype(jnp.float32)
    else:
        mask = (attention_mask + causal_attention_mask).astype(jnp.float32)

    param_list = [
        params["ln1_g"].astype(jnp.float32), params["ln1_b"].astype(jnp.float32),
        q_w_t, q_b, k_w_t, k_b, v_w_t, v_b,
        out_w_t, params["out_b"].astype(jnp.float32),
        params["ln2_g"].astype(jnp.float32), params["ln2_b"].astype(jnp.float32),
        fc1_w_t, params["fc1_b"].astype(jnp.float32),
        fc2_w_t, params["fc2_b"].astype(jnp.float32),
    ]

    def full_spec(arr):
        nd = arr.ndim
        return pl.BlockSpec(arr.shape, lambda b, t, _nd=nd: (0,) * _nd)

    in_specs = [
        # Full sequence block for K/V + residual; block index is constant in the
        # q-tile axis, so it is DMA'd once per batch element and reused.
        pl.BlockSpec((1, S, D), lambda b, t: (b, 0, 0)),
        # Pre-combined mask tile for the current q rows.
        pl.BlockSpec((1, 1, tq, S), lambda b, t: (b, 0, t, 0)),
    ] + [full_spec(p) for p in param_list]

    kernel = functools.partial(
        _encoder_layer_kernel,
        num_heads=num_heads, head_size=head_size, q_tile=tq, eps=eps,
    )

    return pl.pallas_call(
        kernel,
        out_shape=jax.ShapeDtypeStruct((B, S, D), hidden_states.dtype),
        grid_spec=pltpu.PrefetchScalarGridSpec(
            num_scalar_prefetch=0,
            grid=(B, n_q_tiles),
            in_specs=in_specs,
            out_specs=pl.BlockSpec((1, tq, D), lambda b, t: (b, t, 0)),
        ),
        compiler_params=pltpu.CompilerParams(
            dimension_semantics=("parallel", "parallel"),
            vmem_limit_bytes=48 * 1024 * 1024,
        ),
    )(hidden_states, mask, *param_list)


# ----------------------------- pure-JAX reference -----------------------------

def clip_encoder_layer_ref(h, am, cm, p, *, num_heads, eps=1e-5):
    B, S, D = h.shape
    hd = D // num_heads
    scale = hd ** (-0.5)

    def ln(x, g, b):
        mu = jnp.mean(x, axis=-1, keepdims=True)
        var = jnp.mean((x - mu) ** 2, axis=-1, keepdims=True)
        return (x - mu) * jax.lax.rsqrt(var + eps) * g + b

    residual = h
    x = ln(h, p["ln1_g"][0], p["ln1_b"][0])
    qkv = x @ p["qkv_w"].T + p["qkv_b"][0]
    q, k, v = jnp.split(qkv, 3, axis=-1)
    q = q * scale
    q = q.reshape(B, S, num_heads, hd).transpose(0, 2, 1, 3)
    k = k.reshape(B, S, num_heads, hd).transpose(0, 2, 1, 3)
    v = v.reshape(B, S, num_heads, hd).transpose(0, 2, 1, 3)
    w = jnp.einsum("bhqd,bhkd->bhqk", q, k) + cm + am
    w = jax.nn.softmax(w, axis=-1)
    ctx = jnp.einsum("bhqk,bhkd->bhqd", w, v)
    ctx = ctx.transpose(0, 2, 1, 3).reshape(B, S, D)
    attn_out = ctx @ p["out_w"].T + p["out_b"][0]
    h1 = residual + attn_out

    x2 = ln(h1, p["ln2_g"][0], p["ln2_b"][0])
    z = x2 @ p["fc1_w"].T + p["fc1_b"][0]
    z = z * jax.nn.sigmoid(1.702 * z)
    y = z @ p["fc2_w"].T + p["fc2_b"][0]
    return h1 + y


# ----------------------------- main ------------------------------------------

if __name__ == "__main__":
    B, S, D = 2, 8, 32
    H = 4            # num_attention_heads
    I = 64           # intermediate_size
    EPS = 1e-5

    key = jax.random.PRNGKey(0)
    keys = jax.random.split(key, 16)

    def rnd(k, shape, scale=0.02):
        return scale * jax.random.normal(k, shape, dtype=jnp.float32)

    params = {
        "ln1_g": jnp.ones((1, D), jnp.float32),
        "ln1_b": jnp.zeros((1, D), jnp.float32),
        "qkv_w": rnd(keys[0], (3 * D, D)),
        "qkv_b": rnd(keys[1], (1, 3 * D)),
        "out_w": rnd(keys[2], (D, D)),
        "out_b": rnd(keys[3], (1, D)),
        "ln2_g": 1.0 + rnd(keys[4], (1, D)),
        "ln2_b": rnd(keys[5], (1, D)),
        "fc1_w": rnd(keys[6], (I, D)),
        "fc1_b": rnd(keys[7], (1, I)),
        "fc2_w": rnd(keys[8], (D, I)),
        "fc2_b": rnd(keys[9], (1, D)),
    }

    hidden_states = jax.random.normal(keys[10], (B, S, D), dtype=jnp.float32)

    # causal mask: (B, 1, S, S), large negative above the diagonal
    neg = jnp.float32(-1e4)
    causal = jnp.where(
        jnp.arange(S)[:, None] >= jnp.arange(S)[None, :], 0.0, neg
    ).astype(jnp.float32)
    causal_attention_mask = jnp.broadcast_to(causal, (B, 1, S, S))

    # padding attention mask: mask out last 2 keys of batch element 1
    amask = jnp.zeros((B, 1, S, S), jnp.float32)
    amask = amask.at[1, 0, :, S - 2:].set(neg)

    out = clip_encoder_layer(
        hidden_states, amask, causal_attention_mask, params,
        num_heads=H, eps=EPS,
    )
    out = jax.block_until_ready(out)

    ref = clip_encoder_layer_ref(
        hidden_states, amask, causal_attention_mask, params,
        num_heads=H, eps=EPS,
    )

    assert out.shape == (B, S, D)
    max_err = jnp.max(jnp.abs(out - ref))
    # bf16 matmuls + approx reciprocal vs. an all-f32 reference -> relaxed tolerance
    assert jnp.allclose(out, ref, atol=2e-2, rtol=2e-2), f"max abs err = {max_err}"
    print("KERNEL_OK")
</pallas_src>

<mosaic_0001>
module attributes {stable_mosaic.version = 11 : i64} {
  func.func @_encoder_layer_kernel(%arg0: i32, %arg1: i32, %arg2: memref<1x8x32xf32, #tpu.memory_space<vmem>>, %arg3: memref<1x1x8x8xf32, #tpu.memory_space<vmem>>, %arg4: memref<1x32xf32, #tpu.memory_space<vmem>>, %arg5: memref<1x32xf32, #tpu.memory_space<vmem>>, %arg6: memref<32x32xbf16, #tpu.memory_space<vmem>>, %arg7: memref<1x32xf32, #tpu.memory_space<vmem>>, %arg8: memref<32x32xbf16, #tpu.memory_space<vmem>>, %arg9: memref<1x32xf32, #tpu.memory_space<vmem>>, %arg10: memref<32x32xbf16, #tpu.memory_space<vmem>>, %arg11: memref<1x32xf32, #tpu.memory_space<vmem>>, %arg12: memref<32x32xbf16, #tpu.memory_space<vmem>>, %arg13: memref<1x32xf32, #tpu.memory_space<vmem>>, %arg14: memref<1x32xf32, #tpu.memory_space<vmem>>, %arg15: memref<1x32xf32, #tpu.memory_space<vmem>>, %arg16: memref<32x64xbf16, #tpu.memory_space<vmem>>, %arg17: memref<1x64xf32, #tpu.memory_space<vmem>>, %arg18: memref<64x32xbf16, #tpu.memory_space<vmem>>, %arg19: memref<1x32xf32, #tpu.memory_space<vmem>>, %arg20: memref<1x8x32xf32, #tpu.memory_space<vmem>>) attributes {dimension_semantics = [#tpu.dimension_semantics<parallel>, #tpu.dimension_semantics<parallel>], iteration_bounds = array<i64: 2, 1>, scalar_prefetch = 0 : i64, scratch_operands = 0 : i64, tpu.core_type = #tpu.core_type<tc>, window_params = [{transform_indices = @transform_0, window_bounds = array<i64: 1, 8, 32>}, {transform_indices = @transform_1, window_bounds = array<i64: 1, 1, 8, 8>}, {pipeline_mode = #tpu.pipeline_mode<synchronous>, transform_indices = @transform_2, window_bounds = array<i64: 1, 32>}, {pipeline_mode = #tpu.pipeline_mode<synchronous>, transform_indices = @transform_3, window_bounds = array<i64: 1, 32>}, {pipeline_mode = #tpu.pipeline_mode<synchronous>, transform_indices = @transform_4, window_bounds = array<i64: 32, 32>}, {pipeline_mode = #tpu.pipeline_mode<synchronous>, transform_indices = @transform_5, window_bounds = array<i64: 1, 32>}, {pipeline_mode = #tpu.pipeline_mode<synchronous>, transform_indices = @transform_6, window_bounds = array<i64: 32, 32>}, {pipeline_mode = #tpu.pipeline_mode<synchronous>, transform_indices = @transform_7, window_bounds = array<i64: 1, 32>}, {pipeline_mode = #tpu.pipeline_mode<synchronous>, transform_indices = @transform_8, window_bounds = array<i64: 32, 32>}, {pipeline_mode = #tpu.pipeline_mode<synchronous>, transform_indices = @transform_9, window_bounds = array<i64: 1, 32>}, {pipeline_mode = #tpu.pipeline_mode<synchronous>, transform_indices = @transform_10, window_bounds = array<i64: 32, 32>}, {pipeline_mode = #tpu.pipeline_mode<synchronous>, transform_indices = @transform_11, window_bounds = array<i64: 1, 32>}, {pipeline_mode = #tpu.pipeline_mode<synchronous>, transform_indices = @transform_12, window_bounds = array<i64: 1, 32>}, {pipeline_mode = #tpu.pipeline_mode<synchronous>, transform_indices = @transform_13, window_bounds = array<i64: 1, 32>}, {pipeline_mode = #tpu.pipeline_mode<synchronous>, transform_indices = @transform_14, window_bounds = array<i64: 32, 64>}, {pipeline_mode = #tpu.pipeline_mode<synchronous>, transform_indices = @transform_15, window_bounds = array<i64: 1, 64>}, {pipeline_mode = #tpu.pipeline_mode<synchronous>, transform_indices = @transform_16, window_bounds = array<i64: 64, 32>}, {pipeline_mode = #tpu.pipeline_mode<synchronous>, transform_indices = @transform_17, window_bounds = array<i64: 1, 32>}, {transform_indices = @transform_18, window_bounds = array<i64: 1, 8, 32>}]} {
    %c8_i32 = arith.constant 8 : i32
    %0 = arith.muli %arg1, %c8_i32 : i32
    %1 = tpu.assume_multiple %0, 8 : i32
    %c0 = arith.constant 0 : index
    %c0_0 = arith.constant 0 : index
    %c0_1 = arith.constant 0 : index
    %2 = vector.load %arg2[%c0, %c0_0, %c0_1] : memref<1x8x32xf32, #tpu.memory_space<vmem>>, vector<1x8x32xf32>
    %3 = vector.shape_cast %2 : vector<1x8x32xf32> to vector<8x32xf32>
    %cst = arith.constant dense<0.000000e+00> : vector<8xf32>
    %4 = vector.multi_reduction <add>, %3, %cst [1] : vector<8x32xf32> to vector<8xf32>
    %5 = vector.shape_cast %4 : vector<8xf32> to vector<8x1xf32>
    %cst_2 = arith.constant 3.200000e+01 : f32
    %6 = vector.broadcast %cst_2 : f32 to vector<8x1xf32>
    %7 = arith.divf %5, %6 : vector<8x1xf32>
    %8 = vector.broadcast %7 : vector<8x1xf32> to vector<8x32xf32>
    %9 = arith.subf %3, %8 : vector<8x32xf32>
    %10 = arith.mulf %9, %9 : vector<8x32xf32>
    %cst_3 = arith.constant dense<0.000000e+00> : vector<8xf32>
    %11 = vector.multi_reduction <add>, %10, %cst_3 [1] : vector<8x32xf32> to vector<8xf32>
    %12 = vector.shape_cast %11 : vector<8xf32> to vector<8x1xf32>
    %cst_4 = arith.constant 3.200000e+01 : f32
    %13 = vector.broadcast %cst_4 : f32 to vector<8x1xf32>
    %14 = arith.divf %12, %13 : vector<8x1xf32>
    %15 = vector.broadcast %7 : vector<8x1xf32> to vector<8x32xf32>
    %16 = arith.subf %3, %15 : vector<8x32xf32>
    %cst_5 = arith.constant 9.99999974E-6 : f32
    %17 = vector.broadcast %cst_5 : f32 to vector<8x1xf32>
    %18 = arith.addf %14, %17 : vector<8x1xf32>
    %19 = math.rsqrt %18 : vector<8x1xf32>
    %20 = vector.broadcast %19 : vector<8x1xf32> to vector<8x32xf32>
    %21 = arith.mulf %16, %20 : vector<8x32xf32>
    %c0_6 = arith.constant 0 : index
    %c0_7 = arith.constant 0 : index
    %22 = vector.load %arg4[%c0_6, %c0_7] : memref<1x32xf32, #tpu.memory_space<vmem>>, vector<1x32xf32>
    %23 = vector.broadcast %22 : vector<1x32xf32> to vector<8x32xf32>
    %24 = arith.mulf %21, %23 : vector<8x32xf32>
    %c0_8 = arith.constant 0 : index
    %c0_9 = arith.constant 0 : index
    %25 = vector.load %arg5[%c0_8, %c0_9] : memref<1x32xf32, #tpu.memory_space<vmem>>, vector<1x32xf32>
    %26 = vector.broadcast %25 : vector<1x32xf32> to vector<8x32xf32>
    %27 = arith.addf %24, %26 : vector<8x32xf32>
    %28 = arith.truncf %27 : vector<8x32xf32> to vector<8x32xbf16>
    %c0_10 = arith.constant 0 : index
    %29 = arith.index_cast %1 : i32 to index
    %c0_11 = arith.constant 0 : index
    %30 = vector.load %arg2[%c0_10, %29, %c0_11] : memref<1x8x32xf32, #tpu.memory_space<vmem>>, vector<1x8x32xf32>
    %31 = vector.shape_cast %30 : vector<1x8x32xf32> to vector<8x32xf32>
    %cst_12 = arith.constant dense<0.000000e+00> : vector<8xf32>
    %32 = vector.multi_reduction <add>, %31, %cst_12 [1] : vector<8x32xf32> to vector<8xf32>
    %33 = vector.shape_cast %32 : vector<8xf32> to vector<8x1xf32>
    %cst_13 = arith.constant 3.200000e+01 : f32
    %34 = vector.broadcast %cst_13 : f32 to vector<8x1xf32>
    %35 = arith.divf %33, %34 : vector<8x1xf32>
    %36 = vector.broadcast %35 : vector<8x1xf32> to vector<8x32xf32>
    %37 = arith.subf %31, %36 : vector<8x32xf32>
    %38 = arith.mulf %37, %37 : vector<8x32xf32>
    %cst_14 = arith.constant dense<0.000000e+00> : vector<8xf32>
    %39 = vector.multi_reduction <add>, %38, %cst_14 [1] : vector<8x32xf32> to vector<8xf32>
    %40 = vector.shape_cast %39 : vector<8xf32> to vector<8x1xf32>
    %cst_15 = arith.constant 3.200000e+01 : f32
    %41 = vector.broadcast %cst_15 : f32 to vector<8x1xf32>
    %42 = arith.divf %40, %41 : vector<8x1xf32>
    %43 = vector.broadcast %35 : vector<8x1xf32> to vector<8x32xf32>
    %44 = arith.subf %31, %43 : vector<8x32xf32>
    %cst_16 = arith.constant 9.99999974E-6 : f32
    %45 = vector.broadcast %cst_16 : f32 to vector<8x1xf32>
    %46 = arith.addf %42, %45 : vector<8x1xf32>
    %47 = math.rsqrt %46 : vector<8x1xf32>
    %48 = vector.broadcast %47 : vector<8x1xf32> to vector<8x32xf32>
    %49 = arith.mulf %44, %48 : vector<8x32xf32>
    %c0_17 = arith.constant 0 : index
    %c0_18 = arith.constant 0 : index
    %50 = vector.load %arg4[%c0_17, %c0_18] : memref<1x32xf32, #tpu.memory_space<vmem>>, vector<1x32xf32>
    %51 = vector.broadcast %50 : vector<1x32xf32> to vector<8x32xf32>
    %52 = arith.mulf %49, %51 : vector<8x32xf32>
    %c0_19 = arith.constant 0 : index
    %c0_20 = arith.constant 0 : index
    %53 = vector.load %arg5[%c0_19, %c0_20] : memref<1x32xf32, #tpu.memory_space<vmem>>, vector<1x32xf32>
    %54 = vector.broadcast %53 : vector<1x32xf32> to vector<8x32xf32>
    %55 = arith.addf %52, %54 : vector<8x32xf32>
    %56 = arith.truncf %55 : vector<8x32xf32> to vector<8x32xbf16>
    %c0_21 = arith.constant 0 : index
    %c0_22 = arith.constant 0 : index
    %57 = vector.load %arg6[%c0_21, %c0_22] : memref<32x32xbf16, #tpu.memory_space<vmem>>, vector<32x32xbf16>
    %cst_23 = arith.constant dense<0.000000e+00> : vector<8x32xf32>
    %58 = tpu.matmul %56, %57, %cst_23 {dimension_numbers = #tpu.dot_dimension_numbers<[1], [0], [0], [1], [0, 0, 1, 1], [], []>} : vector<8x32xbf16>, vector<32x32xbf16>, vector<8x32xf32> -> vector<8x32xf32>
    %c0_24 = arith.constant 0 : index
    %c0_25 = arith.constant 0 : index
    %59 = vector.load %arg7[%c0_24, %c0_25] : memref<1x32xf32, #tpu.memory_space<vmem>>, vector<1x32xf32>
    %60 = vector.broadcast %59 : vector<1x32xf32> to vector<8x32xf32>
    %61 = arith.addf %58, %60 : vector<8x32xf32>
    %c0_26 = arith.constant 0 : index
    %c0_27 = arith.constant 0 : index
    %62 = vector.load %arg8[%c0_26, %c0_27] : memref<32x32xbf16, #tpu.memory_space<vmem>>, vector<32x32xbf16>
    %cst_28 = arith.constant dense<0.000000e+00> : vector<8x32xf32>
    %63 = tpu.matmul %28, %62, %cst_28 {dimension_numbers = #tpu.dot_dimension_numbers<[1], [0], [0], [1], [0, 0, 1, 1], [], []>} : vector<8x32xbf16>, vector<32x32xbf16>, vector<8x32xf32> -> vector<8x32xf32>
    %c0_29 = arith.constant 0 : index
    %c0_30 = arith.constant 0 : index
    %64 = vector.load %arg9[%c0_29, %c0_30] : memref<1x32xf32, #tpu.memory_space<vmem>>, vector<1x32xf32>
    %65 = vector.broadcast %64 : vector<1x32xf32> to vector<8x32xf32>
    %66 = arith.addf %63, %65 : vector<8x32xf32>
    %c0_31 = arith.constant 0 : index
    %c0_32 = arith.constant 0 : index
    %67 = vector.load %arg10[%c0_31, %c0_32] : memref<32x32xbf16, #tpu.memory_space<vmem>>, vector<32x32xbf16>
    %cst_33 = arith.constant dense<0.000000e+00> : vector<8x32xf32>
    %68 = tpu.matmul %28, %67, %cst_33 {dimension_numbers = #tpu.dot_dimension_numbers<[1], [0], [0], [1], [0, 0, 1, 1], [], []>} : vector<8x32xbf16>, vector<32x32xbf16>, vector<8x32xf32> -> vector<8x32xf32>
    %c0_34 = arith.constant 0 : index
    %c0_35 = arith.constant 0 : index
    %69 = vector.load %arg11[%c0_34, %c0_35] : memref<1x32xf32, #tpu.memory_space<vmem>>, vector<1x32xf32>
    %70 = vector.broadcast %69 : vector<1x32xf32> to vector<8x32xf32>
    %71 = arith.addf %68, %70 : vector<8x32xf32>
    %72 = arith.truncf %61 : vector<8x32xf32> to vector<8x32xbf16>
    %73 = vector.shape_cast %72 : vector<8x32xbf16> to vector<8x4x8xbf16>
    %74 = tpu.transpose %73, [1, 0, 2] : vector<8x4x8xbf16> -> vector<4x8x8xbf16>
    %75 = arith.truncf %66 : vector<8x32xf32> to vector<8x32xbf16>
    %76 = vector.shape_cast %75 : vector<8x32xbf16> to vector<8x4x8xbf16>
    %77 = tpu.transpose %76, [1, 0, 2] : vector<8x4x8xbf16> -> vector<4x8x8xbf16>
    %78 = arith.truncf %71 : vector<8x32xf32> to vector<8x32xbf16>
    %79 = vector.shape_cast %78 : vector<8x32xbf16> to vector<8x4x8xbf16>
    %80 = tpu.transpose %79, [1, 0, 2] : vector<8x4x8xbf16> -> vector<4x8x8xbf16>
    "tpu.trace_start"() <{level = 10 : i32, message = "hqd,hkd->hqk"}> : () -> ()
    %cst_36 = arith.constant dense<0.000000e+00> : vector<4x8x8xf32>
    %81 = tpu.matmul %74, %77, %cst_36 {dimension_numbers = #tpu.dot_dimension_numbers<[2], [2], [1], [1], [0, 0, 0, 1, 1, 1], [0], [0]>} : vector<4x8x8xbf16>, vector<4x8x8xbf16>, vector<4x8x8xf32> -> vector<4x8x8xf32>
    "tpu.trace_stop"() : () -> ()
    %c0_37 = arith.constant 0 : index
    %c0_38 = arith.constant 0 : index
    %c0_39 = arith.constant 0 : index
    %c0_40 = arith.constant 0 : index
    %82 = vector.load %arg3[%c0_37, %c0_38, %c0_39, %c0_40] : memref<1x1x8x8xf32, #tpu.memory_space<vmem>>, vector<1x1x8x8xf32>
    %83 = vector.shape_cast %82 : vector<1x1x8x8xf32> to vector<1x8x8xf32>
    %84 = vector.broadcast %83 : vector<1x8x8xf32> to vector<4x8x8xf32>
    %85 = arith.addf %81, %84 : vector<4x8x8xf32>
    %cst_41 = arith.constant dense<0xFF800000> : vector<4x8xf32>
    %86 = vector.multi_reduction <maximumf>, %85, %cst_41 [2] : vector<4x8x8xf32> to vector<4x8xf32>
    %87 = vector.shape_cast %86 : vector<4x8xf32> to vector<4x8x1xf32>
    %88 = vector.broadcast %87 : vector<4x8x1xf32> to vector<4x8x8xf32>
    %89 = arith.subf %85, %88 : vector<4x8x8xf32>
    %90 = math.exp %89 : vector<4x8x8xf32>
    %cst_42 = arith.constant dense<0.000000e+00> : vector<4x8xf32>
    %91 = vector.multi_reduction <add>, %90, %cst_42 [2] : vector<4x8x8xf32> to vector<4x8xf32>
    %92 = vector.shape_cast %91 : vector<4x8xf32> to vector<4x8x1xf32>
    %93 = tpu.reciprocal %92 {approx = true} : vector<4x8x1xf32> -> vector<4x8x1xf32>
    %94 = vector.broadcast %93 : vector<4x8x1xf32> to vector<4x8x8xf32>
    %95 = arith.mulf %90, %94 : vector<4x8x8xf32>
    %96 = arith.truncf %95 : vector<4x8x8xf32> to vector<4x8x8xbf16>
    "tpu.trace_start"() <{level = 10 : i32, message = "hqk,hkd->hqd"}> : () -> ()
    %cst_43 = arith.constant dense<0.000000e+00> : vector<4x8x8xf32>
    %97 = tpu.matmul %96, %80, %cst_43 {dimension_numbers = #tpu.dot_dimension_numbers<[2], [1], [1], [2], [0, 0, 0, 1, 1, 2], [0], [0]>} : vector<4x8x8xbf16>, vector<4x8x8xbf16>, vector<4x8x8xf32> -> vector<4x8x8xf32>
    "tpu.trace_stop"() : () -> ()
    %98 = tpu.transpose %97, [1, 0, 2] : vector<4x8x8xf32> -> vector<8x4x8xf32>
    %99 = vector.shape_cast %98 : vector<8x4x8xf32> to vector<8x32xf32>
    %100 = arith.truncf %99 : vector<8x32xf32> to vector<8x32xbf16>
    %c0_44 = arith.constant 0 : index
    %c0_45 = arith.constant 0 : index
    %101 = vector.load %arg12[%c0_44, %c0_45] : memref<32x32xbf16, #tpu.memory_space<vmem>>, vector<32x32xbf16>
    %cst_46 = arith.constant dense<0.000000e+00> : vector<8x32xf32>
    %102 = tpu.matmul %100, %101, %cst_46 {dimension_numbers = #tpu.dot_dimension_numbers<[1], [0], [0], [1], [0, 0, 1, 1], [], []>} : vector<8x32xbf16>, vector<32x32xbf16>, vector<8x32xf32> -> vector<8x32xf32>
    %c0_47 = arith.constant 0 : index
    %c0_48 = arith.constant 0 : index
    %103 = vector.load %arg13[%c0_47, %c0_48] : memref<1x32xf32, #tpu.memory_space<vmem>>, vector<1x32xf32>
    %104 = vector.broadcast %103 : vector<1x32xf32> to vector<8x32xf32>
    %105 = arith.addf %102, %104 : vector<8x32xf32>
    %106 = arith.addf %31, %105 : vector<8x32xf32>
    %cst_49 = arith.constant dense<0.000000e+00> : vector<8xf32>
    %107 = vector.multi_reduction <add>, %106, %cst_49 [1] : vector<8x32xf32> to vector<8xf32>
    %108 = vector.shape_cast %107 : vector<8xf32> to vector<8x1xf32>
    %cst_50 = arith.constant 3.200000e+01 : f32
    %109 = vector.broadcast %cst_50 : f32 to vector<8x1xf32>
    %110 = arith.divf %108, %109 : vector<8x1xf32>
    %111 = vector.broadcast %110 : vector<8x1xf32> to vector<8x32xf32>
    %112 = arith.subf %106, %111 : vector<8x32xf32>
    %113 = arith.mulf %112, %112 : vector<8x32xf32>
    %cst_51 = arith.constant dense<0.000000e+00> : vector<8xf32>
    %114 = vector.multi_reduction <add>, %113, %cst_51 [1] : vector<8x32xf32> to vector<8xf32>
    %115 = vector.shape_cast %114 : vector<8xf32> to vector<8x1xf32>
    %cst_52 = arith.constant 3.200000e+01 : f32
    %116 = vector.broadcast %cst_52 : f32 to vector<8x1xf32>
    %117 = arith.divf %115, %116 : vector<8x1xf32>
    %118 = vector.broadcast %110 : vector<8x1xf32> to vector<8x32xf32>
    %119 = arith.subf %106, %118 : vector<8x32xf32>
    %cst_53 = arith.constant 9.99999974E-6 : f32
    %120 = vector.broadcast %cst_53 : f32 to vector<8x1xf32>
    %121 = arith.addf %117, %120 : vector<8x1xf32>
    %122 = math.rsqrt %121 : vector<8x1xf32>
    %123 = vector.broadcast %122 : vector<8x1xf32> to vector<8x32xf32>
    %124 = arith.mulf %119, %123 : vector<8x32xf32>
    %c0_54 = arith.constant 0 : index
    %c0_55 = arith.constant 0 : index
    %125 = vector.load %arg14[%c0_54, %c0_55] : memref<1x32xf32, #tpu.memory_space<vmem>>, vector<1x32xf32>
    %126 = vector.broadcast %125 : vector<1x32xf32> to vector<8x32xf32>
    %127 = arith.mulf %124, %126 : vector<8x32xf32>
    %c0_56 = arith.constant 0 : index
    %c0_57 = arith.constant 0 : index
    %128 = vector.load %arg15[%c0_56, %c0_57] : memref<1x32xf32, #tpu.memory_space<vmem>>, vector<1x32xf32>
    %129 = vector.broadcast %128 : vector<1x32xf32> to vector<8x32xf32>
    %130 = arith.addf %127, %129 : vector<8x32xf32>
    %131 = arith.truncf %130 : vector<8x32xf32> to vector<8x32xbf16>
    %c0_58 = arith.constant 0 : index
    %c0_59 = arith.constant 0 : index
    %132 = vector.load %arg16[%c0_58, %c0_59] : memref<32x64xbf16, #tpu.memory_space<vmem>>, vector<32x64xbf16>
    %cst_60 = arith.constant dense<0.000000e+00> : vector<8x64xf32>
    %133 = tpu.matmul %131, %132, %cst_60 {dimension_numbers = #tpu.dot_dimension_numbers<[1], [0], [0], [1], [0, 0, 1, 1], [], []>} : vector<8x32xbf16>, vector<32x64xbf16>, vector<8x64xf32> -> vector<8x64xf32>
    %c0_61 = arith.constant 0 : index
    %c0_62 = arith.constant 0 : index
    %134 = vector.load %arg17[%c0_61, %c0_62] : memref<1x64xf32, #tpu.memory_space<vmem>>, vector<1x64xf32>
    %135 = vector.broadcast %134 : vector<1x64xf32> to vector<8x64xf32>
    %136 = arith.addf %133, %135 : vector<8x64xf32>
    %cst_63 = arith.constant 1.702000e+00 : f32
    %137 = vector.broadcast %cst_63 : f32 to vector<8x64xf32>
    %138 = arith.mulf %137, %136 : vector<8x64xf32>
    %139 = arith.negf %138 : vector<8x64xf32>
    %140 = math.exp %139 : vector<8x64xf32>
    %cst_64 = arith.constant 1.000000e+00 : f32
    %141 = vector.broadcast %cst_64 : f32 to vector<8x64xf32>
    %142 = arith.addf %141, %140 : vector<8x64xf32>
    %143 = arith.divf %141, %142 : vector<8x64xf32>
    %144 = arith.mulf %136, %143 : vector<8x64xf32>
    %145 = arith.truncf %144 : vector<8x64xf32> to vector<8x64xbf16>
    %c0_65 = arith.constant 0 : index
    %c0_66 = arith.constant 0 : index
    %146 = vector.load %arg18[%c0_65, %c0_66] : memref<64x32xbf16, #tpu.memory_space<vmem>>, vector<64x32xbf16>
    %cst_67 = arith.constant dense<0.000000e+00> : vector<8x32xf32>
    %147 = tpu.matmul %145, %146, %cst_67 {dimension_numbers = #tpu.dot_dimension_numbers<[1], [0], [0], [1], [0, 0, 1, 1], [], []>} : vector<8x64xbf16>, vector<64x32xbf16>, vector<8x32xf32> -> vector<8x32xf32>
    %c0_68 = arith.constant 0 : index
    %c0_69 = arith.constant 0 : index
    %148 = vector.load %arg19[%c0_68, %c0_69] : memref<1x32xf32, #tpu.memory_space<vmem>>, vector<1x32xf32>
    %149 = vector.broadcast %148 : vector<1x32xf32> to vector<8x32xf32>
    %150 = arith.addf %147, %149 : vector<8x32xf32>
    %151 = arith.addf %106, %150 : vector<8x32xf32>
    %c0_70 = arith.constant 0 : index
    %c0_71 = arith.constant 0 : index
    %c0_72 = arith.constant 0 : index
    %152 = vector.load %arg20[%c0_70, %c0_71, %c0_72] : memref<1x8x32xf32, #tpu.memory_space<vmem>>, vector<1x8x32xf32>
    %153 = vector.shape_cast %152 : vector<1x8x32xf32> to vector<8x32xf32>
    %154 = vector.shape_cast %151 : vector<8x32xf32> to vector<1x8x32xf32>
    tpu.vector_store %arg20[%c0_70, %c0_71, %c0_72], %154 {strides = array<i32>} : memref<1x8x32xf32, #tpu.memory_space<vmem>>, vector<1x8x32xf32>,
    return
  }
  func.func @transform_0(%arg0: i32, %arg1: i32) -> (i32, i32, i32) {
    %c0_i32 = arith.constant 0 : i32
    %c0_i32_0 = arith.constant 0 : i32
    %c0_i32_1 = arith.constant 0 : i32
    return %arg0, %c0_i32, %c0_i32_0 : i32, i32, i32
  }
  func.func @transform_1(%arg0: i32, %arg1: i32) -> (i32, i32, i32, i32) {
    %c0_i32 = arith.constant 0 : i32
    %c0_i32_0 = arith.constant 0 : i32
    %c0_i32_1 = arith.constant 0 : i32
    return %arg0, %c0_i32, %arg1, %c0_i32_0 : i32, i32, i32, i32
  }
  func.func @transform_2(%arg0: i32, %arg1: i32) -> (i32, i32) {
    %c0_i32 = arith.constant 0 : i32
    %c0_i32_0 = arith.constant 0 : i32
    %c0_i32_1 = arith.constant 0 : i32
    return %c0_i32, %c0_i32_0 : i32, i32
  }
  func.func @transform_3(%arg0: i32, %arg1: i32) -> (i32, i32) {
    %c0_i32 = arith.constant 0 : i32
    %c0_i32_0 = arith.constant 0 : i32
    %c0_i32_1 = arith.constant 0 : i32
    return %c0_i32, %c0_i32_0 : i32, i32
  }
  func.func @transform_4(%arg0: i32, %arg1: i32) -> (i32, i32) {
    %c0_i32 = arith.constant 0 : i32
    %c0_i32_0 = arith.constant 0 : i32
    %c0_i32_1 = arith.constant 0 : i32
    return %c0_i32, %c0_i32_0 : i32, i32
  }
  func.func @transform_5(%arg0: i32, %arg1: i32) -> (i32, i32) {
    %c0_i32 = arith.constant 0 : i32
    %c0_i32_0 = arith.constant 0 : i32
    %c0_i32_1 = arith.constant 0 : i32
    return %c0_i32, %c0_i32_0 : i32, i32
  }
  func.func @transform_6(%arg0: i32, %arg1: i32) -> (i32, i32) {
    %c0_i32 = arith.constant 0 : i32
    %c0_i32_0 = arith.constant 0 : i32
    %c0_i32_1 = arith.constant 0 : i32
    return %c0_i32, %c0_i32_0 : i32, i32
  }
  func.func @transform_7(%arg0: i32, %arg1: i32) -> (i32, i32) {
    %c0_i32 = arith.constant 0 : i32
    %c0_i32_0 = arith.constant 0 : i32
    %c0_i32_1 = arith.constant 0 : i32
    return %c0_i32, %c0_i32_0 : i32, i32
  }
  func.func @transform_8(%arg0: i32, %arg1: i32) -> (i32, i32) {
    %c0_i32 = arith.constant 0 : i32
    %c0_i32_0 = arith.constant 0 : i32
    %c0_i32_1 = arith.constant 0 : i32
    return %c0_i32, %c0_i32_0 : i32, i32
  }
  func.func @transform_9(%arg0: i32, %arg1: i32) -> (i32, i32) {
    %c0_i32 = arith.constant 0 : i32
    %c0_i32_0 = arith.constant 0 : i32
    %c0_i32_1 = arith.constant 0 : i32
    return %c0_i32, %c0_i32_0 : i32, i32
  }
  func.func @transform_10(%arg0: i32, %arg1: i32) -> (i32, i32) {
    %c0_i32 = arith.constant 0 : i32
    %c0_i32_0 = arith.constant 0 : i32
    %c0_i32_1 = arith.constant 0 : i32
    return %c0_i32, %c0_i32_0 : i32, i32
  }
  func.func @transform_11(%arg0: i32, %arg1: i32) -> (i32, i32) {
    %c0_i32 = arith.constant 0 : i32
    %c0_i32_0 = arith.constant 0 : i32
    %c0_i32_1 = arith.constant 0 : i32
    return %c0_i32, %c0_i32_0 : i32, i32
  }
  func.func @transform_12(%arg0: i32, %arg1: i32) -> (i32, i32) {
    %c0_i32 = arith.constant 0 : i32
    %c0_i32_0 = arith.constant 0 : i32
    %c0_i32_1 = arith.constant 0 : i32
    return %c0_i32, %c0_i32_0 : i32, i32
  }
  func.func @transform_13(%arg0: i32, %arg1: i32) -> (i32, i32) {
    %c0_i32 = arith.constant 0 : i32
    %c0_i32_0 = arith.constant 0 : i32
    %c0_i32_1 = arith.constant 0 : i32
    return %c0_i32, %c0_i32_0 : i32, i32
  }
  func.func @transform_14(%arg0: i32, %arg1: i32) -> (i32, i32) {
    %c0_i32 = arith.constant 0 : i32
    %c0_i32_0 = arith.constant 0 : i32
    %c0_i32_1 = arith.constant 0 : i32
    return %c0_i32, %c0_i32_0 : i32, i32
  }
  func.func @transform_15(%arg0: i32, %arg1: i32) -> (i32, i32) {
    %c0_i32 = arith.constant 0 : i32
    %c0_i32_0 = arith.constant 0 : i32
    %c0_i32_1 = arith.constant 0 : i32
    return %c0_i32, %c0_i32_0 : i32, i32
  }
  func.func @transform_16(%arg0: i32, %arg1: i32) -> (i32, i32) {
    %c0_i32 = arith.constant 0 : i32
    %c0_i32_0 = arith.constant 0 : i32
    %c0_i32_1 = arith.constant 0 : i32
    return %c0_i32, %c0_i32_0 : i32, i32
  }
  func.func @transform_17(%arg0: i32, %arg1: i32) -> (i32, i32) {
    %c0_i32 = arith.constant 0 : i32
    %c0_i32_0 = arith.constant 0 : i32
    %c0_i32_1 = arith.constant 0 : i32
    return %c0_i32, %c0_i32_0 : i32, i32
  }
  func.func @transform_18(%arg0: i32, %arg1: i32) -> (i32, i32, i32) {
    %c0_i32 = arith.constant 0 : i32
    %c0_i32_0 = arith.constant 0 : i32
    return %arg0, %arg1, %c0_i32 : i32, i32, i32
  }
}

</mosaic_0001>

<bundles_post_ra>
// kernel: tpu_custom_call.1
= control target key start
LH: loop header
LB: loop body
LE: loop exit
PB: predicated region body
PF: predicated region fallthrough
CT: control target
= control target key end

     0   :  { %s3775_s0 = inlined_call_operand.vmem [shape: f32[2,8,32], index: 0, kind: input, shape index: {}]   ;;  %s3776_s1 = inlined_call_operand.vmem [shape: f32[2,1,8,8], index: 1, kind: input, shape index: {}]   ;;  %s3777_s2 = inlined_call_operand.hbm [shape: f32[1,32], index: 2, kind: input, shape index: {}]   ;;  %s3778_s3 = inlined_call_operand.hbm [shape: f32[1,32], index: 3, kind: input, shape index: {}]   ;;  %s3779_s4 = inlined_call_operand.vmem [shape: bf16[32,32], index: 4, kind: input, shape index: {}]   ;;  %s3780_s5 = inlined_call_operand.hbm [shape: f32[1,32], index: 5, kind: input, shape index: {}]   ;;  %s3781_s6 = inlined_call_operand.hbm [shape: bf16[32,32], index: 6, kind: input, shape index: {}]   ;;  %s3782_s7 = inlined_call_operand.hbm [shape: f32[1,32], index: 7, kind: input, shape index: {}]   ;;  %s3783_s8 = inlined_call_operand.hbm [shape: bf16[32,32], index: 8, kind: input, shape index: {}]   ;;  %s3784_s9 = inlined_call_operand.hbm [shape: f32[1,32], index: 9, kind: input, shape index: {}]   ;;  %s3785_s10 = inlined_call_operand.vmem [shape: bf16[32,32], index: 10, kind: input, shape index: {}]   ;;  %s3786_s11 = inlined_call_operand.vmem [shape: f32[1,32], index: 11, kind: input, shape index: {}]   ;;  %s3787_s12 = inlined_call_operand.vmem [shape: f32[1,32], index: 12, kind: input, shape index: {}]   ;;  %s3788_s13 = inlined_call_operand.vmem [shape: f32[1,32], index: 13, kind: input, shape index: {}]   ;;  %s3789_s14 = inlined_call_operand.hbm [shape: bf16[32,64], index: 14, kind: input, shape index: {}]   ;;  %s3790_s15 = inlined_call_operand.vmem [shape: f32[1,64], index: 15, kind: input, shape index: {}]   ;;  %s3791_s16 = inlined_call_operand.vmem [shape: bf16[64,32], index: 16, kind: input, shape index: {}]   ;;  %s3792_s17 = inlined_call_operand.vmem [shape: f32[1,32], index: 17, kind: input, shape index: {}]   ;;  %s3793_s18 = inlined_call_operand.hbm [shape: f32[2,8,32], index: 18, kind: output, shape index: {}]  }
   0x1   :  { %3807 = sst [smem:[#allocation30_spill]] %s3775_s0 }
   0x2   :  { %3808 = sst [smem:[#allocation31_spill]] %s3776_s1 }
   0x3   :  { %3809 = sst [smem:[#allocation32_spill]] %s3777_s2 }
   0x4   :  { %3810 = sst [smem:[#allocation33_spill]] %s3778_s3 }
   0x5   :  { %3811 = sst [smem:[#allocation34_spill]] %s3781_s6 }
   0x6   :  { %3812 = sst [smem:[#allocation35_spill]] %s3793_s18 }
   0x7   :  { %23 = vsyncpa [#allocation3], 0 }
   0x8   :  { %24 = vsyncpa [#allocation6], 0 }
   0x9   :  { %25 = vsyncpa [#allocation9], 0 }
   0xa   :  { %26 = vsyncpa [#allocation12], 0 }
   0xb   :  { %27 = vsyncpa [#allocation15], 0 }
   0xc   :  { %28 = vsyncpa [#allocation4], 0 }
   0xd   :  { %30 = vsyncpa [#allocation4 + $0x1], 0  ;;  %s3301_s27 = smov 0   ;;  %s3303_s28 = smov 0  }
   0xe   :  { %s3305_s29 = smov 0   ;;  %s3307_s30 = smov 0  }
   0xf   :  { %s3309_s0 = smov 0   ;;  %s3311_s19 = smov 0  }
  0x10 LB: > { %3813 = sst [smem:[#allocation23_spill]] %s3162_s27  ;;  %s2484_s1 = sadd.s32 4294967295, %s3182_s19   ;;  %s3182_s19 = sphi %s3311_s19, %s36_s19   ;;  %s3178_s0 = sphi %s3309_s0, %s3843_s0   ;;  %s3174_s30 = sphi %s3307_s30, %s3842_s30   ;;  %s3170_s29 = sphi %s3305_s29, %s3841_s29   ;;  %s3166_s28 = sphi %s3303_s28, %s3845_s28   ;;  %s3162_s27 = sphi %s3301_s27, %s3844_s27  }
  0x11   : > { %3814 = sst [smem:[#allocation24_spill]] %s3170_s29  ;;  %s2485_s20 = sadd.s32 4294967294, %s3182_s19  }
  0x12   : > { %3815 = sst [smem:[#allocation25_spill]] %s3178_s0  ;;  %s48_s21 = sadd.s32 1, %s3178_s0 }
  0x13   : > { %3816 = sst [smem:[#allocation26_spill]] %s3182_s19  ;;  %s447_s22 = sadd.s32 1, %s3170_s29 }
  0x14   : > { %p50_p0 = scmp.ge.s32.totalorder %s48_s21, 2  ;;  %p457_p1 = scmp.ne.s32.totalorder %s3170_s29, %s3166_s28 }
  0x15   : > { %p458_p2 = scmp.eq.s32.totalorder %s2484_s1, 1  ;;  %p463_p3 = scmp.ne.s32.totalorder %s3166_s28, %s3162_s27 }
  0x16   : > { %s3847_s21 = smov (%p50_p0, %s48_s21), 0  ;;  %p464_p5 = scmp.eq.s32.totalorder %s2485_s20, 1 }
  0x17   : > { %3817 = sst [smem:[#allocation27_spill]] %s3847_s21  ;;  %p3341_p4 = por %p458_p2, %p457_p1 }
  0x18   : > { %s442_s23 = ssub.s32 %s3178_s0, %s3847_s21  ;;  %p2486_p6 = scmp.ge.s32.totalorder %s3182_s19, 1 }
  0x19   : > { %s3818_s2 = scalar_select %p3341_p4, 1, 0 }
  0x1a   : > { %p445_p7 = scmp.eq.s32.totalorder %s442_s23, 0  ;;  %p3348_p8 = por %p464_p5, %p463_p3 }
  0x1b   : > { %p471_p9 = scmp.lt.s32.totalorder %s3182_s19, 3  ;;  %p3360_p11 = scmp.eq.s32.totalorder %s2484_s1, 0 }
  0x1c   : > { %s3819_s24 = scalar_select %p3348_p8, 1, 0 }
  0x1d   : > { %s3354_s25 = scalar_select %p445_p7, %s3170_s29, %s447_s22  }
  0x1e   : > { %3820 = sst [smem:[#allocation28_spill]] %s3819_s24  ;;  %p3356_p10 = pnand %p2486_p6, %p471_p9 }
  0x1f   : > { %3821 = sst [smem:[#allocation29_spill]] %s3354_s25  ;;  %s3184_s20 = smov [#allocation5]  }
  0x20   : > { %s3822_s26 = scalar_select %p3356_p10, 1, 0 }
  0x21   : > { %s3823_s27 = scalar_select %p3360_p11, 1, 0 }
  0x22   : > { %p2723_p12 = pneg %p3356_p10  ;;  %s495_s23 = sshll.u32 %s3184_s20, 4  ;;  %s496_s23 = int_to_ptr.vmem [resolvable:$true] %s495_s23 }
  0x23   : > { %s3185_s21 = smov [#allocation8]   ;;  %s2889_s25 = scalar_lea.vmem %s496_s23, 16 }
  0x24   : > { %s519_s0 = sshll.u32 %s3185_s21, 4  ;;  %p3368_p13 = pnand %p3360_p11, %p2723_p12  ;;  %s520_s0 = int_to_ptr.vmem [resolvable:$true] %s519_s0 }
  0x25   : > { %p2890_p1 = scmp.ne.s32.totalorder %s496_s23, %s2889_s25  ;;  %s2896_s20 = scalar_lea.vmem %s496_s23, 32 }
  0x26   : > { %p3374_p0 = pneg %p3368_p13  ;;  %p2897_p5 = scmp.lt.s32.totalorder %s496_s23, %s496_s23 }
  0x27   : > { %p2898_p6 = scmp.lt.s32.totalorder %s2896_s20, %s2889_s25 }
  0x28   : > { %p2892_p2 = pnand %p2890_p1, %p3374_p0 }
  0x29   : > { %p2899_p7 = por %p2898_p6, %p2897_p5 }
  0x2a   : > { %p2893_p3 = pneg %p2892_p2 }
  0x2c   : > { %p2900_p9 = pnand %p2899_p7, %p2893_p3 }
  0x2e   : > { %2903 = shalt.err (!%p2900_p9)
}
  0x2f   : > { %s3826_s3 = sld [smem:[#allocation33_spill]]  ;;  %s2915_s24 = scalar_lea.vmem %s520_s0, 256 }
  0x30   : > { %p2916_p12 = scmp.ne.s32.totalorder %s520_s0, %s2915_s24  ;;  %p2923_p1 = scmp.lt.s32.totalorder %s520_s0, %s520_s0 }
  0x31   : > { %p2924_p2 = scmp.lt.s32.totalorder %s2915_s24, %s2915_s24 }
  0x32   : > { %p2918_p8 = pnand %p2916_p12, %p3374_p0 }
  0x33   : > { %p2925_p11 = por %p2924_p2, %p2923_p1 }
  0x34   : > { %p2919_p4 = pneg %p2918_p8 }
  0x35   : > { %2729 = dma.hbm_to_vmem [thread:$0]  (!%p3368_p13), %s3826_s3, 16, %s496_s23, [#allocation6]  }
  0x36   : > { %p2926_p10 = pnand %p2925_p11, %p2919_p4 }
  0x38   : > { %2929 = shalt.err (!%p2926_p10)
}
  0x39   : > { %s3806_s25 = smov 64   ;;  %s3187_s20 = smov 4  }
  0x3a   : > { %s3827_s6 = sld [smem:[#allocation34_spill]]  ;;  %s3188_s21 = smov [#allocation11]  }
  0x3b   : > { %s543_s3 = sshll.u32 %s3188_s21, 4  ;;  %s544_s3 = int_to_ptr.vmem [resolvable:$true] %s543_s3 }
  0x3c   : > { %s2941_s19 = scalar_lea.vmem %s544_s3, 256  ;;  %p2949_p11 = scmp.lt.s32.totalorder %s544_s3, %s544_s3 }
  0x3d   : > { %p2942_p8 = scmp.ne.s32.totalorder %s544_s3, %s2941_s19  ;;  %p2950_p3 = scmp.lt.s32.totalorder %s2941_s19, %s2941_s19 }
  0x3f   : > { %p2944_p4 = pnand %p2942_p8, %p3374_p0  ;;  %p2951_p5 = por %p2950_p3, %p2949_p11 }
  0x40   : > { %2735 = dma.hbm_to_vmem [thread:$0]  (!%p3368_p13), %s3827_s6, 256, %s520_s0, [#allocation9], %s3806_s25, %s3806_s25, %s3187_s20  }
  0x41   : > { %p2945_p10 = pneg %p2944_p4 }
  0x43   : > { %p2952_p6 = pnand %p2951_p5, %p2945_p10 }
  0x45   : > { %2955 = shalt.err (!%p2952_p6)
}
  0x46   : > { %2741 = dma.hbm_to_vmem [thread:$0]  (!%p3368_p13), %s3783_s8, 256, %s544_s3, [#allocation12], %s3806_s25, %s3806_s25, %s3187_s20  }
  0x47   : > { %s3189_s29 = smov [#allocation2]   ;;  %s3190_s21 = smov [#allocation7]  }
  0x48   : > { %s484_s23 = sshll.u32 %s3189_s29, 4  ;;  %s509_s6 = sshll.u32 %s3190_s21, 4  ;;  %s485_s23 = int_to_ptr.vmem [resolvable:$true] %s484_s23  ;;  %s510_s6 = int_to_ptr.vmem [resolvable:$true] %s509_s6 }
  0x49   : > { %s2967_s19 = scalar_lea.vmem %s485_s23, 16  ;;  %s2974_s18 = scalar_lea.vmem %s485_s23, 32 }
  0x4a   : > { %p2968_p7 = scmp.ne.s32.totalorder %s485_s23, %s2967_s19  ;;  %p2975_p1 = scmp.lt.s32.totalorder %s485_s23, %s485_s23 }
  0x4b   : > { %p2976_p2 = scmp.lt.s32.totalorder %s2974_s18, %s2967_s19 }
  0x4c   : > { %p2970_p9 = pnand %p2968_p7, %p3374_p0 }
  0x4d   : > { %p2977_p8 = por %p2976_p2, %p2975_p1 }
  0x4e   : > { %p2971_p12 = pneg %p2970_p9 }
  0x50   : > { %p2978_p4 = pnand %p2977_p8, %p2971_p12 }
  0x52   : > { %2981 = shalt.err (!%p2978_p4)
}
  0x53   : > { %s3828_s0 = sld [smem:[#allocation32_spill]]  ;;  %s2993_s29 = scalar_lea.vmem %s510_s6, 16 }
  0x54   : > { %p2994_p10 = scmp.ne.s32.totalorder %s510_s6, %s2993_s29  ;;  %s3000_s21 = scalar_lea.vmem %s510_s6, 32 }
  0x55   : > { %p3001_p5 = scmp.lt.s32.totalorder %s510_s6, %s510_s6  ;;  %p3002_p6 = scmp.lt.s32.totalorder %s3000_s21, %s2993_s29 }
  0x56   : > { %p2996_p11 = pnand %p2994_p10, %p3374_p0 }
  0x57   : > { %p3003_p7 = por %p3002_p6, %p3001_p5 }
  0x58   : > { %p2997_p3 = pneg %p2996_p11 }
  0x59   : > { %2726 = dma.hbm_to_vmem [thread:$0]  (!%p3368_p13), %s3828_s0, 16, %s485_s23, [#allocation3]  }
  0x5a   : > { %p3004_p9 = pnand %p3003_p7, %p2997_p3 }
  0x5c   : > { %3007 = shalt.err (!%p3004_p9)
}
  0x5d   : > { %2732 = dma.hbm_to_vmem [thread:$0]  (!%p3368_p13), %s3780_s5, 16, %s510_s6, [#allocation6]  }
  0x5e   : > { %s3191_s3 = smov [#allocation10]   ;;  %s3192_s24 = smov [#allocation13]  }
  0x5f   : > { %s533_s23 = sshll.u32 %s3191_s3, 4  ;;  %s557_s0 = sshll.u32 %s3192_s24, 4  ;;  %s534_s23 = int_to_ptr.vmem [resolvable:$true] %s533_s23  ;;  %s558_s0 = int_to_ptr.vmem [resolvable:$true] %s557_s0 }
  0x60   : > { %s3019_s25 = scalar_lea.vmem %s534_s23, 16  ;;  %s3026_s29 = scalar_lea.vmem %s534_s23, 32 }
  0x61   : > { %p3020_p12 = scmp.ne.s32.totalorder %s534_s23, %s3019_s25  ;;  %p3027_p8 = scmp.lt.s32.totalorder %s534_s23, %s534_s23 }
  0x62   : > { %p3028_p4 = scmp.lt.s32.totalorder %s3026_s29, %s3019_s25 }
  0x63   : > { %p3022_p1 = pnand %p3020_p12, %p3374_p0 }
  0x64   : > { %p3029_p10 = por %p3028_p4, %p3027_p8 }
  0x65   : > { %p3023_p2 = pneg %p3022_p1 }
  0x67   : > { %p3030_p11 = pnand %p3029_p10, %p3023_p2 }
  0x69   : > { %3033 = shalt.err (!%p3030_p11)
}
  0x6a   : > { %2738 = dma.hbm_to_vmem [thread:$0]  (!%p3368_p13), %s3782_s7, 16, %s534_s23, [#allocation9]  }
  0x6b   : > { %s3045_s18 = scalar_lea.vmem %s558_s0, 16  ;;  %s3052_s19 = scalar_lea.vmem %s558_s0, 32 }
  0x6c   : > { %p3046_p3 = scmp.ne.s32.totalorder %s558_s0, %s3045_s18  ;;  %p3053_p7 = scmp.lt.s32.totalorder %s558_s0, %s558_s0 }
  0x6d   : > { %p3054_p9 = scmp.lt.s32.totalorder %s3052_s19, %s3045_s18 }
  0x6e   : > { %p3048_p5 = pnand %p3046_p3, %p3374_p0 }
  0x6f   : > { %p3055_p12 = por %p3054_p9, %p3053_p7 }
  0x70   : > { %p3049_p6 = pneg %p3048_p5 }
  0x72   : > { %p3056_p1 = pnand %p3055_p12, %p3049_p6 }
  0x74   : > { %3059 = shalt.err (!%p3056_p1)
}
  0x75   : > { %2744 = dma.hbm_to_vmem [thread:$0]  (!%p3368_p13), %s3784_s9, 16, %s558_s0, [#allocation12]  }
  0x76   : > { %s3193_s24 = smov [#allocation14]  }
  0x77   : > { %s579_s23 = sshll.u32 %s3193_s24, 4  ;;  %s580_s23 = int_to_ptr.vmem [resolvable:$true] %s579_s23 }
  0x78   : > { %s3071_s29 = scalar_lea.vmem %s580_s23, 256  ;;  %p3079_p10 = scmp.lt.s32.totalorder %s580_s23, %s580_s23 }
  0x79   : > { %p3072_p2 = scmp.ne.s32.totalorder %s580_s23, %s3071_s29  ;;  %p3080_p11 = scmp.lt.s32.totalorder %s3071_s29, %s3071_s29 }
  0x7b   : > { %p3074_p8 = pnand %p3072_p2, %p3374_p0  ;;  %p3081_p3 = por %p3080_p11, %p3079_p10 }
  0x7d   : > { %p3075_p4 = pneg %p3074_p8 }
  0x7f   : > { %p3082_p5 = pnand %p3081_p3, %p3075_p4 }
  0x81   : > { %3085 = shalt.err (!%p3082_p5)
}
  0x82   : > { %s3829_s6 = smov 64   ;;  %p3830_p6 = scmp.ne.s32.totalorder %s3822_s26, 0 }
  0x83   : > { %2747 = dma.hbm_to_vmem [thread:$0]  (!%p3368_p13), %s3789_s14, 256, %s580_s23, [#allocation15], %s3829_s6, %s3829_s6, %s3187_s20  }
  0x84   : > { %621 = sbr.rel (%p3830_p6) target bundleno = 2660 (0xa64), region = 92  ;;  %p3831_p0 = scmp.ne.s32.totalorder (!%p3830_p6), %s3823_s27, 0 }
  0x89   : > { %3137 = dma.done.wait (%p3831_p0), [#allocation3], 16  }
  0x8a   : > { %3139 = vsyncadd (%p3831_p0), [#allocation3], 4294967280 }
  0x8b   : > { %3141 = dma.done.wait (%p3831_p0), [#allocation6], 32  }
  0x8c   : > { %3143 = vsyncadd (%p3831_p0), [#allocation6], 4294967264 }
  0x8d   : > { %3145 = dma.done.wait (%p3831_p0), [#allocation9], 272  }
  0x8e   : > { %3147 = vsyncadd (%p3831_p0), [#allocation9], 4294967024 }
  0x8f   : > { %3149 = dma.done.wait (%p3831_p0), [#allocation12], 272  }
  0x90   : > { %3151 = vsyncadd (%p3831_p0), [#allocation12], 4294967024 }
  0x91   : > { %3153 = dma.done.wait (%p3831_p0), [#allocation15], 256  }
  0x92   : > { %3155 = vsyncadd (%p3831_p0), [#allocation15], 4294967040  ;;  %p709_p13 = scmp.lt.s32.totalorder %s3174_s30, 1  ;;  %s3832_s18 = sld [smem:[#allocation30_spill]]  ;;  %vm723_vm0 = vcmask 261120   ;;  %v2838_v12 = vld [vmem:[#allocation8 + $0x8] sm:$0xff]   ;;  %v979_v57 = vlaneseq }
  0x93   : > { %v2839_v13 = vld [vmem:[%s3779_s4 + $0x8] sm:$0xff]   ;;  %v3194_v14 = vmov 0.0   ;;  %vm3195_vm1 = vmmov 0   ;;  %v2841_v16 = vld [vmem:[%s3779_s4] sm:$0xff]   ;;  %v2843_v36 = vld [vmem:[#allocation11] sm:$0xff]   ;;  %s3196_s23 = smov 120  }
  0x94   : > { %s3467_s26 = scalar_select %p709_p13, %s3174_s30, 1  ;;  %2597 = vmatprep.subr.bf16.mxu1 %v3194_v14  ;;  %2589 = vmatprep.subr.bf16.mxu0 %v3194_v14  ;;  %v2840_v15 = vld [vmem:[#allocation8] sm:$0xff]   ;;  %v2508_v24 = vld [vmem:[#allocation2] ss:$0 sm:$0xff]  ;;  %v2509_v26 = vld [vmem:[#allocation5] ss:$0 sm:$0xff] }
  0x95   : > { %2598 = vmatpush3.bf16.msra.mxu1 %v2838_v12  ;;  %2590 = vmatpush3.bf16.msra.mxu0 %v2839_v13  ;;  %v2842_v34 = vld [vmem:[#allocation11 + $0x8] sm:$0xff]   ;;  %v2514_v37 = vld [vmem:[#allocation10] ss:$0 sm:$0xff]  ;;  %s3197_s29 = smov 112   ;;  %s3198_s6 = smov 104   ;;  %v980_v59 = vshrl.u32 %v979_v57, 7 }
  0x96   : > { %s2506_s22 = sshll.u32 %s3467_s26, 3  ;;  %2599 = vmatprep.subr.bf16.mxu1 %v3194_v14  ;;  %2601 = vmatprep.mubr.msk.bf16.mxu1 %vm3195_vm1, %v3194_v14  ;;  %v2510_v41 = vld [vmem:[#allocation7] ss:$0 sm:$0xff]  ;;  %v3199_v55 = vmov 1983009808   ;;  %vm1476_vm2 = vcmask 64512  }
  0x97   : > { %2591 = vmatprep.subr.bf16.mxu0 %v3194_v14  ;;  %2593 = vmatprep.mubr.msk.bf16.mxu0 %vm3195_vm1, %v3194_v14  ;;  %v977_v56 = vunpack.c.l.s4 %v3199_v55  ;;  %v3200_v60 = vmov 1934713408   ;;  %s3833_s1 = sld [smem:[#allocation31_spill]]  ;;  %vm1712_vm3 = vcmask 1043456   ;;  %s3202_s27 = smov 16   ;;  %vm2043_vm4 = vcmask 130048  }
  0x98   : > { %s712_s19 = scalar_lea.vmem %s3832_s18, %s2506_s22  ;;  %v994_v61 = vunpack.c.l.s4 %v3200_v60  ;;  %s3203_s25 = smov 8   ;;  %vm2045_vm5 = vcmask 195584   ;;  %vm2259_vm6 = vcmask 523264  }
  0x99   : > { %v3475_v0 = vld [vmem:[%s712_s19] sm:$0xff]  ;;  %2600 = vmatpush3.bf16.msra.mxu1 %v2840_v15  ;;  %2592 = vmatpush3.bf16.msra.mxu0 %v2841_v16  ;;  %v978_v58 = vunpack.c.0.s8 %v977_v56  ;;  %s3204_s3 = smov 24   ;;  %s2550_s0 = sshll.u32 %s3174_s30, 7 }
  0x9a   : > { %v724_v1 = vsel %vm723_vm0, %v3475_v0, 0.0  ;;  %2613 = vmatprep.subr.bf16.mxu1 %v3194_v14  ;;  %2605 = vmatprep.subr.bf16.mxu0 %v3194_v14  ;;  %v995_v63 = vunpack.c.0.s8 %v994_v61  ;;  %s3834_s18 = sld [smem:[#allocation35_spill]]  ;;  %p3835_p9 = scmp.ne.s32.totalorder %s3818_s2, 0 }
  0x9b   : > { %725 = vadd.xlane.f32.xlu0 %v724_v1  ;;  %v3518_v62 = vsub.s32 %v978_v58, %v980_v59 }
  0x9d   : > { %s719_s20 = scalar_lea.vmem %s3833_s1, %s2506_s22 }
  0x9f   : > { %758 = vadd.xlane.f32.xlu0 %v724_v1 }
  0xa0   : > { %s3728_s19 = scalar_lea.hbm %s3834_s18, %s2550_s0 }
 0x124   : > { %v726_v2 = vpop.xlane.xlu0 %725 }
 0x125   : > { %v728_v3 = vmul.f32 0.03125, %v726_v2 }
 0x127   : > { %v729_v4 = vsub.f32 %v3475_v0, %v728_v3  ;;  %v3520_v3 = vsub.s32 %v995_v63, %v980_v59 }
 0x128   : > { %v759_v5 = vpop.xlane.xlu0 %758 }
 0x129   : > { %v760_v6 = vmul.f32 0.03125, %v759_v5  ;;  %v730_v7 = vmul.f32 %v729_v4, %v729_v4 }
 0x12b   : > { %v761_v8 = vsub.f32 %v3475_v0, %v760_v6  ;;  %v731_v9 = vsel %vm723_vm0, %v730_v7, 0.0 }
 0x12c   : > { %732 = vadd.xlane.f32.xlu1 %v731_v9 }
 0x12d   : > { %v762_v10 = vmul.f32 %v761_v8, %v761_v8 }
 0x12f   : > { %v763_v11 = vsel %vm723_vm0, %v762_v10, 0.0 }
 0x130   : > { %764 = vadd.xlane.f32.xlu1 %v763_v11 }
 0x1b5   : > { %v733_v17 = vpop.xlane.xlu1 %732 }
 0x1b6   : > { %v734_v18 = vmul.f32 0.03125, %v733_v17 }
 0x1b8   : > { %v735_v19 = vadd.f32 1e-05, %v734_v18  ;;  %v3201_v18 = vmov 0  }
 0x1b9   : > { %v765_v20 = vpop.xlane.xlu1 %764 }
 0x1ba   : > { %2852 = vrsqrt.f32 %v735_v19  ;;  %v766_v21 = vmul.f32 0.03125, %v765_v20 }
 0x1bc   : > { %v767_v22 = vadd.f32 1e-05, %v766_v21 }
 0x1be   : > { %2854 = vrsqrt.f32 %v767_v22 }
 0x1c7   : > { %v2853_v23 = vpop.eup %2852 }
 0x1c8   : > { %v737_v25 = vmul.f32 %v2853_v23, %v729_v4 }
 0x1ca   : > { %v745_v27 = vmul.f32 %v2508_v24, %v737_v25 }
 0x1cb   : > { %v2855_v28 = vpop.eup %2854 }
 0x1cc   : > { %v753_v29 = vadd.f32 %v2509_v26, %v745_v27  ;;  %v769_v30 = vmul.f32 %v2855_v28, %v761_v8 }
 0x1ce   : > { %v754_v31 = vpack.c.bf16 %v753_v29, %v753_v29  ;;  %v770_v32 = vmul.f32 %v2508_v24, %v769_v30 }
 0x1d0   : > { %2602 = vmatmul.mubr.msk.bf16.vlgmr.msra.gmra.mxu1 %vm723_vm0, %v754_v31  ;;  %v771_v33 = vadd.f32 %v2509_v26, %v770_v32 }
 0x1d1   : > { %2615 = vmatprep.mubr.msk.bf16.mxu1 %vm3195_vm1, %v3194_v14 }
 0x1d2   : > { %v772_v35 = vpack.c.bf16 %v771_v33, %v771_v33 }
 0x1d4   : > { %2594 = vmatmul.mubr.msk.bf16.vlgmr.msra.gmra.mxu0 %vm723_vm0, %v772_v35 }
 0x1d5   : > { %2606 = vmatpush3.bf16.msra.mxu0 %v2842_v34  ;;  %2609 = vmatprep.mubr.msk.bf16.mxu0 %vm3195_vm1, %v3194_v14 }
 0x1d6   : > { %2607 = vmatprep.subr.bf16.mxu0 %v3194_v14 }
 0x1d9   : > { %2608 = vmatpush3.bf16.msra.mxu0 %v2843_v36 }
 0x1da   : > { %2619 = vmatprep.subr.bf16.mxu0 %v3194_v14 }
 0x1dc   : > { %2610 = vmatmul.mubr.msk.bf16.vlgmr.msra.gmra.mxu0 %vm723_vm0, %v754_v31 }
 0x1dd   : > { %2621 = vmatprep.mubr.msk.bf16.mxu0 %vm3195_vm1, %v3194_v14 }
 0x290   : > { %v899_v38 = vpop.f32.mrf.mxu1 }
 0x291   : > { %v900_v39 = vadd.f32 %v2514_v37, %v899_v38 }
 0x292   : > { %v2603_v40 = vpop.f32.mrf.mxu1 }
 0x293   : > { %v1137_v42 = vpack.c.bf16 %v900_v39, %v900_v39 }
 0x294   : > { %v833_v43 = vpop.f32.mrf.mxu0  ;;  %v902_v44 = vpop.f32.mrf.mxu1 }
 0x295   : > { %v834_v45 = vadd.f32 %v2510_v41, %v833_v43  ;;  %1139 = vrot.lane.b32.xlu0 %v1137_v42, %s3196_s23  ;;  %1141 = vrot.lane.b32.xlu1 %v1137_v42, %s3197_s29  ;;  %v1151_v4 = vrot.slane %v1137_v42, %v3518_v62 }
 0x296   : > { %v2595_v46 = vpop.f32.mrf.mxu0  ;;  %v2604_v47 = vpop.f32.mrf.mxu1 }
 0x297   : > { %v968_v48 = vpack.c.bf16 %v834_v45, %v834_v45 }
 0x298   : > { %v836_v49 = vpop.f32.mrf.mxu0 }
 0x299   : > { %1143 = vrot.lane.b32.xlu1 %v1137_v42, %s3198_s6  ;;  %972 = vrot.lane.b32.xlu0 %v968_v48, %s3197_s29  ;;  %v982_v21 = vrot.slane %v968_v48, %v3518_v62 }
 0x29a   : > { %v2596_v50 = vpop.f32.mrf.mxu0 }
 0x29c   : > { %v3514_v51 = vpop.f32.mrf.mxu0 }
 0x29d   : > { %970 = vrot.lane.b32.xlu1 %v968_v48, %s3196_s23 }
 0x29e   : > { %v2611_v52 = vpop.f32.mrf.mxu0 }
 0x2a0   : > { %v965_v53 = vpop.f32.mrf.mxu0 }
 0x2a1   : > { %974 = vrot.lane.b32.xlu1 %v968_v48, %s3198_s6 }
 0x2a2   : > { %v2612_v54 = vpop.f32.mrf.mxu0 }
 0x307   : > { %v1142_v1 = vpop.permute.xlu1 %1141  ;;  %v1140_v2 = vpop.permute.xlu0 %1139 }
 0x308   : > { %v1159_v5 = vrot.slane %v1142_v1, %v3518_v62  ;;  %v1185_v13 = vrot.slane %v1140_v2, %v3518_v62 }
 0x30a   : > { %v1160_v6 = vcombine.low %v1151_v4, %v1159_v5  ;;  %v1161_v7 = vcombine.high %v1151_v4, %v1159_v5 }
 0x30b   : > { %v1144_v8 = vpop.permute.xlu1 %1143  ;;  %v973_v9 = vpop.permute.xlu0 %972 }
 0x30c   : > { %v1168_v10 = vrot.slane %v1160_v6, %v3520_v3  ;;  %v1175_v11 = vrot.slane %v1161_v7, %v3520_v3  ;;  %v1193_v12 = vrot.slane %v1144_v8, %v3518_v62  ;;  %v990_v15 = vrot.slane %v973_v9, %v3518_v62 }
 0x30e   : > { %v1194_v16 = vcombine.low %v1185_v13, %v1193_v12  ;;  %v1195_v17 = vcombine.high %v1185_v13, %v1193_v12  ;;  %v1176_v19 = vcombine.high %v1168_v10, %v3201_v18  ;;  %v1177_v20 = vcombine.high %v1175_v11, %v3201_v18 }
 0x30f   : > { %v971_v22 = vpop.permute.xlu1 %970  ;;  %v1216_v25 = vshrl.u32 %v1168_v10, 16  ;;  %v1232_v26 = vshrl.u32 %v1175_v11, 16  ;;  %v991_v27 = vcombine.low %v982_v21, %v990_v15  ;;  %v992_v28 = vcombine.high %v982_v21, %v990_v15 }
 0x310   : > { %v1202_v23 = vrot.slane %v1194_v16, %v3520_v3  ;;  %v1209_v24 = vrot.slane %v1195_v17, %v3520_v3  ;;  %v1224_v33 = vshrl.u32 %v1176_v19, 16  ;;  %v1240_v34 = vshrl.u32 %v1177_v20, 16 }
 0x311   : > { %v999_v44 = vrot.slane %v991_v27, %v3520_v3  ;;  %v1006_v50 = vrot.slane %v992_v28, %v3520_v3  ;;  %v1016_v53 = vrot.slane %v971_v22, %v3518_v62 }
 0x312   : > { %v1210_v29 = vcombine.high %v1202_v23, %v3201_v18  ;;  %v1211_v30 = vcombine.high %v1209_v24, %v3201_v18  ;;  %v1214_v31 = vpack.i.b16 %v1202_v23, %v1168_v10  ;;  %v1217_v32 = vshrl.u32 %v1202_v23, 16 }
 0x313   : > { %v1230_v35 = vpack.i.b16 %v1209_v24, %v1175_v11  ;;  %v1233_v36 = vshrl.u32 %v1209_v24, 16  ;;  %v975_v45 = vpop.permute.xlu1 %974  ;;  %v1007_v57 = vcombine.high %v999_v44, %v3201_v18  ;;  %v1008_v61 = vcombine.high %v1006_v50, %v3201_v18 }
 0x314   : > { %v1218_v37 = vpack.i.b16 %v1217_v32, %v1216_v25  ;;  %v1222_v38 = vpack.i.b16 %v1210_v29, %v1176_v19  ;;  %v1225_v39 = vshrl.u32 %v1210_v29, 16  ;;  %v1238_v40 = vpack.i.b16 %v1211_v30, %v1177_v20 }
 0x315   : > { %v1234_v41 = vpack.i.b16 %v1233_v36, %v1232_v26  ;;  %v1241_v42 = vshrl.u32 %v1211_v30, 16  ;;  %v1244_v43 = vcombine.low %v1214_v31, %v1230_v35  ;;  %v1024_v54 = vrot.slane %v975_v45, %v3518_v62 }
 0x316   : > { %v1226_v46 = vpack.i.b16 %v1225_v39, %v1224_v33  ;;  %v1252_v47 = vcombine.low %v1222_v38, %v1238_v40  ;;  %v1047_v2 = vshrl.u32 %v999_v44, 16  ;;  %v1055_v6 = vshrl.u32 %v1007_v57, 16 }
 0x317   : > { %v1242_v48 = vpack.i.b16 %v1241_v42, %v1240_v34  ;;  %v1269_v49 = vcombine.low %v1218_v37, %v1234_v41  ;;  %v1251_v52 = vrot.slane %v1244_v43, %v3518_v62  ;;  %v1025_v58 = vcombine.low %v1016_v53, %v1024_v54 }
 0x318   : > { %v1259_v55 = vrot.slane %v1252_v47, %v3518_v62  ;;  %v1026_v59 = vcombine.high %v1016_v53, %v1024_v54  ;;  %v1063_v7 = vshrl.u32 %v1006_v50, 16  ;;  %v1071_v15 = vshrl.u32 %v1008_v61, 16 }
 0x319   : > { %v1277_v56 = vcombine.low %v1226_v46, %v1242_v48  ;;  %v1276_v63 = vrot.slane %v1269_v49, %v3518_v62  ;;  %v1033_v4 = vrot.slane %v1025_v58, %v3520_v3 }
 0x31a   : > { %v1260_v60 = vcombine.low %v1251_v52, %v1259_v55  ;;  %v1040_v5 = vrot.slane %v1026_v59, %v3520_v3 }
 0x31b   : > { %v1284_v1 = vrot.slane %v1277_v56, %v3518_v62  ;;  %v1041_v10 = vcombine.high %v1033_v4, %v3201_v18  ;;  %v1045_v12 = vpack.i.b16 %v1033_v4, %v999_v44  ;;  %v1048_v13 = vshrl.u32 %v1033_v4, 16  ;;  %v1475_v4 = vld [vmem:[%s719_s20] sm:$0xff] }
 0x31c   : > { %v1267_v8 = vrot.slane %v1260_v60, %v3520_v3  ;;  %v1042_v11 = vcombine.high %v1040_v5, %v3201_v18  ;;  %v1061_v16 = vpack.i.b16 %v1040_v5, %v1006_v50  ;;  %v1064_v17 = vshrl.u32 %v1040_v5, 16 }
 0x31d   : > { %v1285_v9 = vcombine.low %v1276_v63, %v1284_v1  ;;  %v1049_v20 = vpack.i.b16 %v1048_v13, %v1047_v2  ;;  %v1053_v21 = vpack.i.b16 %v1041_v10, %v1007_v57  ;;  %v1056_v22 = vshrl.u32 %v1041_v10, 16 }
 0x31e   : > { %v1069_v23 = vpack.i.b16 %v1042_v11, %v1008_v61  ;;  %v1065_v24 = vpack.i.b16 %v1064_v17, %v1063_v7  ;;  %v1072_v25 = vshrl.u32 %v1042_v11, 16  ;;  %v1075_v26 = vcombine.low %v1045_v12, %v1061_v16 }
 0x31f   : > { %v1292_v19 = vrot.slane %v1285_v9, %v3520_v3  ;;  %v1057_v28 = vpack.i.b16 %v1056_v22, %v1055_v6  ;;  %v1297_v30 = vshrl.u32 %v1267_v8, 16  ;;  %v1268_v44 = vcombine.high %v1267_v8, %v3201_v18 }
 0x320   : > { %v1083_v29 = vcombine.low %v1053_v21, %v1069_v23  ;;  %v1073_v32 = vpack.i.b16 %v1072_v25, %v1071_v15  ;;  %v1100_v33 = vcombine.low %v1049_v20, %v1065_v24  ;;  %v1082_v35 = vrot.slane %v1075_v26, %v3518_v62 }
 0x321   : > { %v1296_v27 = vpack.i.b16 %v1292_v19, %v1267_v8  ;;  %v1298_v31 = vshrl.u32 %v1292_v19, 16  ;;  %v1293_v39 = vcombine.high %v1292_v19, %v3201_v18  ;;  %v1303_v50 = vshrl.u32 %v1268_v44, 16 }
 0x322   : > { %v1090_v36 = vrot.slane %v1083_v29, %v3518_v62  ;;  %v1108_v38 = vcombine.low %v1057_v28, %v1073_v32  ;;  %v1107_v42 = vrot.slane %v1100_v33, %v3518_v62 }
 0x323   : > { %v1481_v34 = vsel %vm1476_vm2, %v1296_v27, 0  ;;  %v1299_v37 = vpack.i.b16 %v1298_v31, %v1297_v30  ;;  %v1304_v47 = vshrl.u32 %v1293_v39, 16  ;;  %v1302_v49 = vpack.i.b16 %v1293_v39, %v1268_v44  ;;  %v2518_v27 = vld [vmem:[#allocation13] ss:$0 sm:$0xff] }
 0x324   : > { %2614 = vmatpush3.bf16.xpose.msra.mxu1 %v1481_v34  ;;  %v1091_v40 = vcombine.low %v1082_v35, %v1090_v36  ;;  %v1115_v43 = vrot.slane %v1108_v38, %v3518_v62  ;;  %v963_v32 = vadd.f32 %v2518_v27, %v3514_v51 }
 0x325   : > { %2625 = vmatprep.subr.bf16.mxu1 %v3194_v14  ;;  %v1527_v41 = vsel %vm1476_vm2, %v1299_v37, 0  ;;  %v1305_v55 = vpack.i.b16 %v1304_v47, %v1303_v50  ;;  %v1573_v56 = vsel %vm1476_vm2, %v1302_v49, 0 }
 0x326   : > { %2620 = vmatpush3.bf16.xpose.msra.mxu0 %v1527_v41  ;;  %v1116_v45 = vcombine.low %v1107_v42, %v1115_v43  ;;  %v1098_v46 = vrot.slane %v1091_v40, %v3520_v3  ;;  %v1306_v33 = vpack.c.bf16 %v963_v32, %v963_v32 }
 0x327   : > { %2631 = vmatprep.subr.bf16.mxu0 %v3194_v14  ;;  %v1619_v59 = vsel %vm1476_vm2, %v1305_v55, 0 }
 0x328   : > { %v1123_v48 = vrot.slane %v1116_v45, %v3520_v3  ;;  %v1128_v53 = vshrl.u32 %v1098_v46, 16  ;;  %v1099_v60 = vcombine.high %v1098_v46, %v3201_v18 }
 0x32a   : > { %v1127_v52 = vpack.i.b16 %v1123_v48, %v1098_v46  ;;  %v1129_v54 = vshrl.u32 %v1123_v48, 16  ;;  %v1124_v58 = vcombine.high %v1123_v48, %v3201_v18  ;;  %v1134_v1 = vshrl.u32 %v1099_v60, 16 }
 0x32c   : > { %2616 = vmatmul.mubr.msk.bf16.vlgmr.msra.gmra.mxu1 %vm1476_vm2, %v1127_v52  ;;  %v1130_v57 = vpack.i.b16 %v1129_v54, %v1128_v53  ;;  %v1135_v61 = vshrl.u32 %v1124_v58, 16  ;;  %v1133_v63 = vpack.i.b16 %v1124_v58, %v1099_v60 }
 0x32d   : > { %2626 = vmatpush3.bf16.xpose.msra.mxu1 %v1573_v56  ;;  %2627 = vmatprep.mubr.msk.bf16.mxu1 %vm3195_vm1, %v3194_v14  ;;  %v1320_v56 = vrot.slane %v1306_v33, %v3518_v62 }
 0x32e   : > { %2622 = vmatmul.mubr.msk.bf16.vlgmr.msra.gmra.mxu0 %vm1476_vm2, %v1130_v57  ;;  %2637 = vmatprep.subr.bf16.mxu1 %v3194_v14  ;;  %v1136_v2 = vpack.i.b16 %v1135_v61, %v1134_v1 }
 0x32f   : > { %2632 = vmatpush3.bf16.xpose.msra.mxu0 %v1619_v59  ;;  %2633 = vmatprep.mubr.msk.bf16.mxu0 %vm3195_vm1, %v3194_v14 }
 0x330   : > { %2643 = vmatprep.subr.bf16.mxu0 %v3194_v14 }
 0x334   : > { %2628 = vmatmul.mubr.msk.bf16.vlgmr.msra.gmra.mxu1 %vm1476_vm2, %v1133_v63 }
 0x335   : > { %2639 = vmatprep.mubr.msk.bf16.mxu1 %vm3195_vm1, %v3194_v14 }
 0x336   : > { %2634 = vmatmul.mubr.msk.bf16.vlgmr.msra.gmra.mxu0 %vm1476_vm2, %v1136_v2 }
 0x337   : > { %2645 = vmatprep.mubr.msk.bf16.mxu0 %vm3195_vm1, %v3194_v14 }
 0x3ec   : > { %v1517_v5 = vpop.f32.mrf.mxu1 }
 0x3ed   : > { %v1518_v6 = vadd.f32 %v1517_v5, %v1475_v4 }
 0x3ee   : > { %v2617_v7 = vpop.f32.mrf.mxu1  ;;  %v1563_v8 = vpop.f32.mrf.mxu0 }
 0x3ef   : > { %v1564_v9 = vadd.f32 %v1563_v8, %v1475_v4  ;;  %v1661_v10 = vsel %vm1476_vm2, %v1518_v6, -inf }
 0x3f0   : > { %v2623_v11 = vpop.f32.mrf.mxu0  ;;  %1662 = vmax.xlane.f32.xlu0 %v1661_v10  ;;  %v1520_v12 = vpop.f32.mrf.mxu1 }
 0x3f1   : > { %v1664_v13 = vsel %vm1476_vm2, %v1564_v9, -inf }
 0x3f2   : > { %1665 = vmax.xlane.f32.xlu1 %v1664_v13  ;;  %v2618_v15 = vpop.f32.mrf.mxu1  ;;  %v1566_v16 = vpop.f32.mrf.mxu0 }
 0x3f4   : > { %v2624_v17 = vpop.f32.mrf.mxu0  ;;  %v1609_v19 = vpop.f32.mrf.mxu1 }
 0x3f5   : > { %v1610_v20 = vadd.f32 %v1609_v19, %v1475_v4 }
 0x3f6   : > { %v2629_v21 = vpop.f32.mrf.mxu1  ;;  %v1655_v22 = vpop.f32.mrf.mxu0 }
 0x3f7   : > { %v1656_v23 = vadd.f32 %v1655_v22, %v1475_v4  ;;  %v1667_v24 = vsel %vm1476_vm2, %v1610_v20, -inf }
 0x3f8   : > { %v2635_v25 = vpop.f32.mrf.mxu0  ;;  %1668 = vmax.xlane.f32.xlu0 %v1667_v24  ;;  %v1612_v26 = vpop.f32.mrf.mxu1 }
 0x3f9   : > { %v1670_v30 = vsel %vm1476_vm2, %v1656_v23, -inf }
 0x3fa   : > { %v2630_v28 = vpop.f32.mrf.mxu1  ;;  %v1658_v29 = vpop.f32.mrf.mxu0 }
 0x3fc   : > { %v2636_v31 = vpop.f32.mrf.mxu0  ;;  %1671 = vmax.xlane.f32.xlu0 %v1670_v30 }
 0x403   : > { %1310 = vrot.lane.b32.xlu1 %v1306_v33, %s3197_s29 }
 0x479   : > { %v1663_v34 = vpop.xlane.xlu0 %1662 }
 0x47a   : > { %v1673_v35 = vsub.f32 %v1518_v6, %v1663_v34 }
 0x47b   : > { %v1666_v36 = vpop.xlane.xlu1 %1665 }
 0x47c   : > { %v1677_v37 = vmul.f32 1.442695, %v1673_v35  ;;  %v1674_v38 = vsub.f32 %v1564_v9, %v1666_v36 }
 0x47e   : > { %2856 = vpow2.f32 %v1677_v37  ;;  %v1679_v39 = vmul.f32 1.442695, %v1674_v38 }
 0x47f   : > { %v1311_v54 = vpop.permute.xlu1 %1310 }
 0x480   : > { %2858 = vpow2.f32 %v1679_v39  ;;  %v1328_v55 = vrot.slane %v1311_v54, %v3518_v62 }
 0x481   : > { %v1669_v43 = vpop.xlane.xlu0 %1668 }
 0x482   : > { %v1675_v46 = vsub.f32 %v1610_v20, %v1669_v43  ;;  %v1329_v58 = vcombine.low %v1320_v56, %v1328_v55  ;;  %v1330_v60 = vcombine.high %v1320_v56, %v1328_v55 }
 0x484   : > { %v1681_v48 = vmul.f32 1.442695, %v1675_v46  ;;  %v1337_v63 = vrot.slane %v1329_v58, %v3520_v3  ;;  %v1344_v5 = vrot.slane %v1330_v60, %v3520_v3 }
 0x485   : > { %v1672_v44 = vpop.xlane.xlu0 %1671 }
 0x486   : > { %v1676_v45 = vsub.f32 %v1656_v23, %v1672_v44  ;;  %v1345_v8 = vcombine.high %v1337_v63, %v3201_v18  ;;  %v1346_v11 = vcombine.high %v1344_v5, %v3201_v18  ;;  %v1385_v12 = vshrl.u32 %v1337_v63, 16 }
 0x487   : > { %v1401_v20 = vshrl.u32 %v1344_v5, 16 }
 0x488   : > { %v1683_v47 = vmul.f32 1.442695, %v1676_v45  ;;  %v1393_v19 = vshrl.u32 %v1345_v8, 16  ;;  %v1409_v27 = vshrl.u32 %v1346_v11, 16 }
 0x48a   : > { %2860 = vpow2.f32 %v1683_v47 }
 0x48b   : > { %v3593_v40 = vpop.eup %2856  ;;  %2862 = vpow2.f32 %v1681_v48 }
 0x48c   : > { %v1685_v41 = vsel %vm1476_vm2, %v3593_v40, 0.0 }
 0x48d   : > { %v3597_v42 = vpop.eup %2858  ;;  %1686 = vadd.xlane.f32.xlu0 %v1685_v41 }
 0x48e   : > { %v1688_v51 = vsel %vm1476_vm2, %v3597_v42, 0.0 }
 0x48f   : > { %1689 = vadd.xlane.f32.xlu1 %v1688_v51 }
 0x497   : > { %v3603_v49 = vpop.eup %2860 }
 0x498   : > { %v3605_v50 = vpop.eup %2862  ;;  %v1694_v52 = vsel %vm1476_vm2, %v3603_v49, 0.0 }
 0x499   : > { %v1691_v53 = vsel %vm1476_vm2, %v3605_v50, 0.0 }
 0x4a0   : > { %1312 = vrot.lane.b32.xlu1 %v1306_v33, %s3198_s6 }
 0x4a3   : > { %1308 = vrot.lane.b32.xlu0 %v1306_v33, %s3196_s23  ;;  %s706_s23 = sand.u32 1, %s3166_s28  }
 0x4a4   : > { %s2505_s29 = sshll.u32 %s706_s23, 3  ;;  %s2306_s30 = scalar_lea.sflag [#allocation4], %s706_s23 }
 0x4a5   : > { %s708_s1 = scalar_lea.vmem [#allocation16], %s2505_s29 }
 0x4a6   : > { %s2320_s20 = sshll.u32 %s708_s1, 4  ;;  %s3730_s20 = int_to_ptr.vmem [resolvable:$true] %s2320_s20 }
 0x4c2   : > { %1695 = vadd.xlane.f32.xlu0 %v1694_v52 }
 0x4c4   : > { %1692 = vadd.xlane.f32.xlu1 %v1691_v53 }
 0x516   : > { %v1687_v57 = vpop.xlane.xlu0 %1686 }
 0x517   : > { %2864 = vrcp.f32 %v1687_v57 }
 0x518   : > { %v1690_v59 = vpop.xlane.xlu1 %1689 }
 0x519   : > { %2866 = vrcp.f32 %v1690_v59 }
 0x51a   : > { %v1309_v61 = vpop.permute.xlu0 %1308 }
 0x51b   : > { %v1354_v2 = vrot.slane %v1309_v61, %v3518_v62 }
 0x51c   : > { %v1313_v1 = vpop.permute.xlu1 %1312 }
 0x51d   : > { %v1362_v4 = vrot.slane %v1313_v1, %v3518_v62 }
 0x51f   : > { %v1363_v6 = vcombine.low %v1354_v2, %v1362_v4  ;;  %v1364_v7 = vcombine.high %v1354_v2, %v1362_v4 }
 0x521   : > { %v1371_v9 = vrot.slane %v1363_v6, %v3520_v3  ;;  %v1378_v10 = vrot.slane %v1364_v7, %v3520_v3 }
 0x523   : > { %v1379_v13 = vcombine.high %v1371_v9, %v3201_v18  ;;  %v1380_v15 = vcombine.high %v1378_v10, %v3201_v18  ;;  %v1383_v16 = vpack.i.b16 %v1371_v9, %v1337_v63  ;;  %v1386_v17 = vshrl.u32 %v1371_v9, 16 }
 0x524   : > { %v1399_v21 = vpack.i.b16 %v1378_v10, %v1344_v5  ;;  %v1402_v22 = vshrl.u32 %v1378_v10, 16  ;;  %v2865_v43 = vpop.eup %2864 }
 0x525   : > { %v1387_v23 = vpack.i.b16 %v1386_v17, %v1385_v12  ;;  %v1391_v24 = vpack.i.b16 %v1379_v13, %v1345_v8  ;;  %v1394_v25 = vshrl.u32 %v1379_v13, 16  ;;  %v1407_v26 = vpack.i.b16 %v1380_v15, %v1346_v11 }
 0x526   : > { %v1403_v28 = vpack.i.b16 %v1402_v22, %v1401_v20  ;;  %v1410_v29 = vshrl.u32 %v1380_v15, 16  ;;  %v1413_v30 = vcombine.low %v1383_v16, %v1399_v21  ;;  %v2867_v45 = vpop.eup %2866  ;;  %v1701_v48 = vmul.f32 %v2865_v43, %v3593_v40 }
 0x527   : > { %v1395_v31 = vpack.i.b16 %v1394_v25, %v1393_v19  ;;  %v1421_v32 = vcombine.low %v1391_v24, %v1407_v26  ;;  %v1702_v56 = vmul.f32 %v2867_v45, %v3597_v42 }
 0x528   : > { %v1411_v33 = vpack.i.b16 %v1410_v29, %v1409_v27  ;;  %v1438_v34 = vcombine.low %v1387_v23, %v1403_v28  ;;  %v1420_v35 = vrot.slane %v1413_v30, %v3518_v62  ;;  %v1705_v1 = vpack.c.bf16 %v1701_v48, %v1701_v48 }
 0x529   : > { %v1428_v36 = vrot.slane %v1421_v32, %v3518_v62  ;;  %v1706_v2 = vpack.c.bf16 %v1702_v56, %v1702_v56 }
 0x52a   : > { %v1446_v37 = vcombine.low %v1395_v31, %v1411_v33  ;;  %v1445_v39 = vrot.slane %v1438_v34, %v3518_v62 }
 0x52b   : > { %v1429_v38 = vcombine.low %v1420_v35, %v1428_v36 }
 0x52c   : > { %v1453_v41 = vrot.slane %v1446_v37, %v3518_v62 }
 0x52d   : > { %v1436_v51 = vrot.slane %v1429_v38, %v3520_v3 }
 0x52e   : > { %v1454_v44 = vcombine.low %v1445_v39, %v1453_v41  ;;  %v2844_v39 = vld [vmem:[%s3785_s10 + $0x8] sm:$0xff]  }
 0x52f   : > { %v1437_v46 = vcombine.high %v1436_v51, %v3201_v18  ;;  %v1466_v53 = vshrl.u32 %v1436_v51, 16 }
 0x530   : > { %v1461_v47 = vrot.slane %v1454_v44, %v3520_v3 }
 0x531   : > { %v1472_v57 = vshrl.u32 %v1437_v46, 16 }
 0x532   : > { %v1465_v52 = vpack.i.b16 %v1461_v47, %v1436_v51  ;;  %v1467_v54 = vshrl.u32 %v1461_v47, 16  ;;  %v1462_v55 = vcombine.high %v1461_v47, %v3201_v18 }
 0x534   : > { %v1714_v58 = vsel %vm1712_vm3, %v1465_v52, 0  ;;  %v1468_v59 = vpack.i.b16 %v1467_v54, %v1466_v53  ;;  %v1471_v60 = vpack.i.b16 %v1462_v55, %v1437_v46  ;;  %v1473_v61 = vshrl.u32 %v1462_v55, 16  ;;  %v2845_v53 = vld [vmem:[%s3785_s10] sm:$0xff]  }
 0x535   : > { %2638 = vmatpush3.bf16.msra.mxu1 %v1714_v58 }
 0x536   : > { %v1760_v63 = vsel %vm1712_vm3, %v1468_v59, 0  ;;  %2649 = vmatprep.subr.bf16.mxu1 %v3194_v14  ;;  %v1474_v40 = vpack.i.b16 %v1473_v61, %v1472_v57  ;;  %v1806_v18 = vsel %vm1712_vm3, %v1471_v60, 0 }
 0x537   : > { %2644 = vmatpush3.bf16.msra.mxu0 %v1760_v63 }
 0x538   : > { %2640 = vmatmul.mubr.msk.bf16.vlgmr.msra.gmra.mxu1 %vm1476_vm2, %v1705_v1  ;;  %2655 = vmatprep.subr.bf16.mxu0 %v3194_v14  ;;  %v1852_v42 = vsel %vm1712_vm3, %v1474_v40, 0 }
 0x539   : > { %2650 = vmatpush3.bf16.msra.mxu1 %v1806_v18  ;;  %2651 = vmatprep.mubr.msk.bf16.mxu1 %vm3195_vm1, %v3194_v14 }
 0x53a   : > { %2646 = vmatmul.mubr.msk.bf16.vlgmr.msra.gmra.mxu0 %vm1476_vm2, %v1706_v2  ;;  %2661 = vmatprep.subr.bf16.mxu1 %v3194_v14 }
 0x53b   : > { %2656 = vmatpush3.bf16.msra.mxu0 %v1852_v42  ;;  %2657 = vmatprep.mubr.msk.bf16.mxu0 %vm3195_vm1, %v3194_v14 }
 0x53c   : > { %2669 = vmatprep.subr.bf16.mxu0 %v3194_v14 }
 0x54b   : > { %v1696_v4 = vpop.xlane.xlu0 %1695 }
 0x54c   : > { %2868 = vrcp.f32 %v1696_v4 }
 0x54d   : > { %v1693_v5 = vpop.xlane.xlu1 %1692 }
 0x54e   : > { %2870 = vrcp.f32 %v1693_v5 }
 0x559   : > { %v2869_v6 = vpop.eup %2868 }
 0x55a   : > { %v1704_v7 = vmul.f32 %v2869_v6, %v3603_v49 }
 0x55b   : > { %v2871_v8 = vpop.eup %2870 }
 0x55c   : > { %v1708_v9 = vpack.c.bf16 %v1704_v7, %v1704_v7  ;;  %v1703_v10 = vmul.f32 %v2871_v8, %v3605_v50 }
 0x55e   : > { %2658 = vmatmul.mubr.msk.bf16.vlgmr.msra.gmra.mxu0 %vm1476_vm2, %v1708_v9  ;;  %v1707_v11 = vpack.c.bf16 %v1703_v10, %v1703_v10 }
 0x55f   : > { %2673 = vmatprep.mubr.msk.bf16.mxu0 %vm3195_vm1, %v3194_v14 }
 0x560   : > { %2652 = vmatmul.mubr.msk.bf16.vlgmr.msra.gmra.mxu1 %vm1476_vm2, %v1707_v11  ;;  %v2532_v11 = vld [vmem:[%s3786_s11] ss:$0 sm:$0xff] }
 0x561   : > { %2665 = vmatprep.mubr.msk.bf16.mxu1 %vm3195_vm1, %v3194_v14  ;;  %2662 = vmatpush3.bf16.msra.mxu1 %v2844_v39  ;;  %v2538_v39 = vld [vmem:[%s3790_s15] ss:$0 sm:$0xff] }
 0x562   : > { %2663 = vmatprep.subr.bf16.mxu1 %v3194_v14 }
 0x565   : > { %2664 = vmatpush3.bf16.msra.mxu1 %v2845_v53 }
 0x566   : > { %2677 = vmatprep.subr.bf16.mxu1 %v3194_v14 }
 0x5f8   : > { %v1750_v12 = vpop.f32.mrf.mxu1 }
 0x5fa   : > { %v2641_v13 = vpop.f32.mrf.mxu1  ;;  %v1796_v15 = vpop.f32.mrf.mxu0 }
 0x5fc   : > { %v1753_v16 = vpop.f32.mrf.mxu1  ;;  %v2647_v49 = vpop.f32.mrf.mxu0 }
 0x5fe   : > { %v2642_v17 = vpop.f32.mrf.mxu1  ;;  %v1799_v19 = vpop.f32.mrf.mxu0 }
 0x600   : > { %v2648_v20 = vpop.f32.mrf.mxu0 }
 0x61e   : > { %v1888_v50 = vpop.f32.mrf.mxu0 }
 0x61f   : > { %v1910_v21 = vcombine.low %v1796_v15, %v1888_v50  ;;  %v1911_v22 = vcombine.high %v1796_v15, %v1888_v50 }
 0x620   : > { %v1842_v23 = vpop.f32.mrf.mxu1  ;;  %v2659_v24 = vpop.f32.mrf.mxu0 }
 0x621   : > { %v1894_v25 = vcombine.low %v1750_v12, %v1842_v23  ;;  %v1895_v26 = vcombine.high %v1750_v12, %v1842_v23  ;;  %v1918_v29 = vrot.slane %v1910_v21, %v3518_v62  ;;  %v1925_v30 = vrot.slane %v1911_v22, %v3518_v62  ;;  %v2846_v24 = vld [vmem:[#allocation14 + $0x8] sm:$0xff]  }
 0x622   : > { %v2653_v27 = vpop.f32.mrf.mxu1  ;;  %v1891_v28 = vpop.f32.mrf.mxu0  ;;  %2670 = vmatpush3.bf16.msra.mxu0 %v2846_v24 }
 0x623   : > { %v1902_v31 = vrot.slane %v1894_v25, %v3518_v62  ;;  %v1909_v32 = vrot.slane %v1895_v26, %v3518_v62  ;;  %v2847_v25 = vld [vmem:[#allocation14] sm:$0xff]   ;;  %2671 = vmatprep.subr.bf16.mxu0 %v3194_v14 }
 0x624   : > { %v1845_v33 = vpop.f32.mrf.mxu1  ;;  %v2660_v34 = vpop.f32.mrf.mxu0 }
 0x625   : > { %v1926_v35 = vcombine.low %v1902_v31, %v1918_v29  ;;  %v1927_v36 = vcombine.high %v1902_v31, %v1918_v29  ;;  %v1942_v37 = vcombine.low %v1909_v32, %v1925_v30  ;;  %v1943_v38 = vcombine.high %v1909_v32, %v1925_v30  ;;  %v2536_v29 = vld [vmem:[%s3787_s12] ss:$0 sm:$0xff] }
 0x626   : > { %v2654_v41 = vpop.f32.mrf.mxu1  ;;  %2672 = vmatpush3.bf16.msra.mxu0 %v2847_v25  ;;  %v2537_v31 = vld [vmem:[%s3788_s13] ss:$0 sm:$0xff] }
 0x627   : > { %v1934_v51 = vrot.slane %v1926_v35, %v3520_v3  ;;  %v1941_v43 = vrot.slane %v1927_v36, %v3520_v3  ;;  %v1950_v44 = vrot.slane %v1942_v37, %v3520_v3  ;;  %v1957_v45 = vrot.slane %v1943_v38, %v3520_v3  ;;  %v2848_v35 = vld [vmem:[%s3791_s16 + $0x18] sm:$0xff]   ;;  %v2849_v36 = vld [vmem:[%s3791_s16 + $0x10] sm:$0xff]   ;;  %v2850_v37 = vld [vmem:[%s3791_s16 + $0x8] sm:$0xff]  }
 0x628   : > { %v2851_v38 = vld [vmem:[%s3791_s16] sm:$0xff]  }
 0x629   : > { %v1962_v46 = vcombine.low %v1934_v51, %v1941_v43  ;;  %v2530_v47 = vcombine.high %v1934_v51, %v1941_v43  ;;  %v1978_v48 = vcombine.low %v1950_v44, %v1957_v45  ;;  %v2531_v52 = vcombine.high %v1950_v44, %v1957_v45 }
 0x62b   : > { %v1969_v54 = vrot.slane %v1962_v46, %v3518_v62  ;;  %v1977_v55 = vrot.slane %v2530_v47, %v3518_v62  ;;  %v1985_v56 = vrot.slane %v1978_v48, %v3518_v62  ;;  %v1993_v57 = vrot.slane %v2531_v52, %v3518_v62 }
 0x62d   : > { %v1995_v58 = vcombine.high %v1969_v54, %v1977_v55  ;;  %v2011_v59 = vcombine.high %v1985_v56, %v1993_v57  ;;  %v1994_v60 = vcombine.low %v1969_v54, %v1977_v55  ;;  %v2010_v61 = vcombine.low %v1985_v56, %v1993_v57  ;;  %v2543_v55 = vld [vmem:[%s3792_s17] ss:$0 sm:$0xff] }
 0x62f   : > { %v2009_v63 = vrot.slane %v1995_v58, %v3520_v3  ;;  %v2025_v1 = vrot.slane %v2011_v59, %v3520_v3  ;;  %v2002_v40 = vrot.slane %v1994_v60, %v3520_v3  ;;  %v2018_v18 = vrot.slane %v2010_v61, %v3520_v3 }
 0x631   : > { %v2028_v2 = vcombine.low %v2009_v63, %v2025_v1  ;;  %v2027_v42 = vcombine.high %v2002_v40, %v2018_v18  ;;  %v2026_v4 = vcombine.low %v2002_v40, %v2018_v18  ;;  %v2029_v62 = vcombine.high %v2009_v63, %v2025_v1 }
 0x633   : > { %2035 = vrot.lane.b32.xlu1 %v2028_v2, %s3202_s27  ;;  %2031 = vrot.lane.b32.xlu0 %v2027_v42, %s3203_s25  ;;  %s3086_s27 = scalar_lea.vmem %s3730_s20, 128  ;;  %s3205_s25 = smov [#allocation16]  }
 0x634   : > { %p3087_p7 = scmp.ne.s32.totalorder %s3730_s20, %s3086_s27 }
 0x636   : > { %p3088_p12 = pnand %p3087_p7, %p3835_p9 }
 0x637   : > { %2039 = vrot.lane.b32.xlu1 %v2029_v62, %s3204_s3  ;;  %s3090_s3 = sshll.u32 %s3205_s25, 4  ;;  %s3091_s3 = int_to_ptr.vmem [resolvable:$false] %s3090_s3 }
 0x638   : > { %p3089_p1 = pneg %p3088_p12  ;;  %s3092_s24 = scalar_lea.vmem %s3091_s3, 256 }
 0x639   : > { %p3093_p2 = scmp.lt.s32.totalorder %s3730_s20, %s3091_s3  ;;  %p3094_p8 = scmp.lt.s32.totalorder %s3092_s24, %s3086_s27 }
 0x63b   : > { %p3095_p4 = por %p3094_p8, %p3093_p2 }
 0x63d   : > { %p3096_p10 = pnand %p3095_p4, %p3089_p1 }
 0x6a5   : > { %v2036_v5 = vpop.permute.xlu1 %2035  ;;  %v2032_v6 = vpop.permute.xlu0 %2031 }
 0x6a6   : > { %v2042_v7 = vsel %vm1476_vm2, %v2026_v4, %v2032_v6 }
 0x6a7   : > { %v2044_v9 = vsel %vm2043_vm4, %v2042_v7, %v2036_v5 }
 0x6a9   : > { %v2040_v8 = vpop.permute.xlu1 %2039 }
 0x6aa   : > { %v2046_v10 = vsel %vm2045_vm5, %v2044_v9, %v2040_v8 }
 0x6ab   : > { %v2047_v3 = vpack.c.bf16 %v2046_v10, %v2046_v10 }
 0x6ad   : > { %2666 = vmatmul.mubr.msk.bf16.vlgmr.msra.gmra.mxu1 %vm723_vm0, %v2047_v3 }
 0x6ae   : > { %2685 = vmatprep.mubr.msk.bf16.mxu1 %vm3195_vm1, %v3194_v14  ;;  %2678 = vmatpush3.bf16.msra.mxu1 %v2848_v35 }
 0x6af   : > { %2679 = vmatprep.subr.bf16.mxu1 %v3194_v14 }
 0x6b2   : > { %2680 = vmatpush3.bf16.msra.mxu1 %v2849_v36 }
 0x6b3   : > { %2681 = vmatprep.subr.bf16.mxu1 %v3194_v14 }
 0x6b6   : > { %2682 = vmatpush3.bf16.msra.mxu1 %v2850_v37 }
 0x6b7   : > { %2683 = vmatprep.subr.bf16.mxu1 %v3194_v14 }
 0x6ba   : > { %2684 = vmatpush3.bf16.msra.mxu1 %v2851_v38 }
 0x76d   : > { %v2108_v12 = vpop.f32.mrf.mxu1 }
 0x76e   : > { %v2109_v13 = vadd.f32 %v2532_v11, %v2108_v12 }
 0x76f   : > { %v2667_v15 = vpop.f32.mrf.mxu1 }
 0x770   : > { %v3687_v16 = vadd.f32 %v2109_v13, %v3475_v0 }
 0x771   : > { %v2111_v49 = vpop.f32.mrf.mxu1 }
 0x772   : > { %v2115_v17 = vsel %vm723_vm0, %v3687_v16, 0.0 }
 0x773   : > { %2116 = vadd.xlane.f32.xlu0 %v2115_v17  ;;  %v2668_v19 = vpop.f32.mrf.mxu1 }
 0x7fc   : > { %v2117_v20 = vpop.xlane.xlu0 %2116 }
 0x7fd   : > { %v2118_v50 = vmul.f32 0.03125, %v2117_v20 }
 0x7ff   : > { %v2119_v21 = vsub.f32 %v3687_v16, %v2118_v50 }
 0x801   : > { %v2120_v22 = vmul.f32 %v2119_v21, %v2119_v21 }
 0x803   : > { %v2121_v23 = vsel %vm723_vm0, %v2120_v22, 0.0 }
 0x804   : > { %2122 = vadd.xlane.f32.xlu1 %v2121_v23 }
 0x88d   : > { %v2123_v0 = vpop.xlane.xlu1 %2122 }
 0x88e   : > { %v2124_v26 = vmul.f32 0.03125, %v2123_v0 }
 0x890   : > { %v2125_v27 = vadd.f32 1e-05, %v2124_v26 }
 0x892   : > { %2872 = vrsqrt.f32 %v2125_v27 }
 0x89f   : > { %v2873_v28 = vpop.eup %2872 }
 0x8a0   : > { %v2127_v30 = vmul.f32 %v2873_v28, %v2119_v21 }
 0x8a2   : > { %v2135_v32 = vmul.f32 %v2536_v29, %v2127_v30 }
 0x8a4   : > { %v2143_v33 = vadd.f32 %v2537_v31, %v2135_v32 }
 0x8a6   : > { %v2144_v34 = vpack.c.bf16 %v2143_v33, %v2143_v33 }
 0x8a8   : > { %2674 = vmatmul.mubr.msk.bf16.vlgmr.msra.gmra.mxu0 %vm723_vm0, %v2144_v34 }
 0x968   : > { %v2205_v41 = vpop.f32.mrf.mxu0 }
 0x969   : > { %v2206_v51 = vadd.f32 %v2538_v39, %v2205_v41 }
 0x96a   : > { %v2675_v43 = vpop.f32.mrf.mxu0 }
 0x96b   : > { %v2542_v44 = vmul.f32 -1.702, %v2206_v51 }
 0x96c   : > { %v2208_v45 = vpop.f32.mrf.mxu0 }
 0x96d   : > { %v2213_v46 = vmul.f32 1.442695, %v2542_v44 }
 0x96e   : > { %v2676_v47 = vpop.f32.mrf.mxu0 }
 0x96f   : > { %2874 = vpow2.f32 %v2213_v46 }
 0x97c   : > { %v2875_v14 = vpop.eup %2874 }
 0x97d   : > { %v2215_v48 = vadd.f32 1.0, %v2875_v14 }
 0x97f   : > { %2876 = vrcp.f32 %v2215_v48 }
 0x98c   : > { %v2877_v52 = vpop.eup %2876 }
 0x98d   : > { %v2218_v53 = vmul.f32 %v2877_v52, %v2206_v51 }
 0x98f   : > { %v2219_v54 = vpack.c.bf16 %v2218_v53, %v2218_v53 }
 0x991   : > { %2686 = vmatmul.mubr.msk.bf16.vlgmr.msra.gmra.mxu1 %vm2259_vm6, %v2219_v54 }
 0xa51   : > { %v2297_v56 = vpop.f32.mrf.mxu1 }
 0xa52   : > { %v2298_v57 = vadd.f32 %v2543_v55, %v2297_v56 }
 0xa53   : > { %v2687_v58 = vpop.f32.mrf.mxu1 }
 0xa54   : > { %v2303_v59 = vadd.f32 %v2298_v57, %v3687_v16 }
 0xa55   : > { %v2300_v60 = vpop.f32.mrf.mxu1 }
 0xa56   : > { %2304 = vst.msk [vmem:[%s708_s1] sm:$0xff] %vm723_vm0, %v2303_v59 }
 0xa57   : > { %v2688_v61 = vpop.f32.mrf.mxu1 }
 0xa58   : > { %3099 = shalt.err (!%p3096_p10)
}
 0xa59   : > { %s3100_s29 = scalar_lea.hbm %s3728_s19, 128  ;;  %s3104_s21 = scalar_lea.hbm %s3834_s18, 256 }
 0xa5a   : > { %p3101_p11 = scmp.ne.s32.totalorder %s3728_s19, %s3100_s29  ;;  %p3105_p6 = scmp.lt.s32.totalorder %s3728_s19, %s3834_s18 }
 0xa5b   : > { %p3106_p0 = scmp.lt.s32.totalorder %s3104_s21, %s3100_s29 }
 0xa5c   : > { %p3102_p3 = pnand %p3101_p11, %p3835_p9 }
 0xa5d   : > { %p3107_p13 = por %p3106_p0, %p3105_p6 }
 0xa5e   : > { %p3103_p5 = pneg %p3102_p3 }
 0xa60   : > { %p3108_p7 = pnand %p3107_p13, %p3103_p5 }
 0xa62   : > { %3111 = shalt.err (!%p3108_p7)
}
 0xa63   : > { %2721 = dma.vmem_to_hbm [thread:$0]  (%p3835_p9), %s3730_s20, 128, %s3728_s19, %s2306_s30  }
 0xa64 PF: > { %s3836_s26 = sld [smem:[#allocation26_spill]] }
 0xa65   : > { %s3837_s22 = sld [smem:[#allocation23_spill]] }
 0xa66   : > { %s3838_s27 = sld [smem:[#allocation28_spill]] }
 0xa6a   : > { %p2768_p12 = scmp.ge.s32.totalorder %s3836_s26, 2 }
 0xa6b   : > { %s2332_s25 = sand.u32 1, %s3837_s22  }
 0xa6c   : > { %p3839_p1 = scmp.ne.s32.totalorder %s3838_s27, 0  ;;  %s2333_s3 = scalar_lea.sflag [#allocation4], %s2332_s25 }
 0xa6e   : > { %p2749_p2 = pnand %p2768_p12, %p3839_p1 }
 0xa70   : > { %p2750_p8 = pneg %p2749_p2 }
 0xa72   : > { %3157 = dma.done.wait (%p2750_p8), %s2333_s3, 128  }
 0xa73   : > { %3159 = vsyncadd (%p2750_p8), %s2333_s3, 4294967168  ;;  %s36_s19 = sadd.s32 1, %s3836_s26   ;;  %s3840_s2 = sld [smem:[#allocation24_spill]] }
 0xa74   : > { %p33_p4 = scmp.ge.s32.totalorder %s36_s19, 4   ;;  %s3841_s29 = sld [smem:[#allocation29_spill]] }
 0xa75   : > { %s3842_s30 = sld [smem:[#allocation25_spill]]  ;;  %s3844_s27 = smov %s3166_s28 }
 0xa76   : > { %s3843_s0 = sld [smem:[#allocation27_spill]]  ;;  %35 = sbr.rel (!%p33_p4) target bundleno = 16 (0x10), region = 164 }
 0xa79   : > { %s3845_s28 = smov %s3840_s2 }
 0xa7b   :  { %2338 = vsyncpa [#allocation3], 1 }
 0xa7c   :  { %2340 = vsyncpa [#allocation3 + $0x1], 1 }
 0xa7d   :  { %2341 = vsyncpa [#allocation6], 1 }
 0xa7e   :  { %2342 = vsyncpa [#allocation9], 1 }
 0xa7f   :  { %2343 = vsyncpa [#allocation12], 1 }
 0xa80   :  { %2344 = vsyncpa [#allocation15], 1 }
 0xa81   :  { %2345 = vsyncpa [#allocation4], 1 }
 0xa82   :  { %2347 = vsyncpa [#allocation4 + $0x1], 1 }

</bundles_post_ra>
